<compile_context>
chip_gen: v7x
topology: tpu7x:2x2x1
jax: 0.10.0
libtpu: 0.0.40
codegen_flags: <defaults>
</compile_context>

<pallas_src>
import jax
import jax.numpy as jnp
from jax.experimental import pallas as pl
from jax.experimental.pallas import tpu as pltpu


HEAD_PAD = 128   # fused-head output width, padded to a full 128-lane vreg


# ------------------------------ fused kernel ------------------------------- #

def _btsnet_fused_kernel(x_ref, wc_ref, bc_ref, wh_ref, bh_ref, o_ref, xp_ref):
    """Backbone conv3x3 + ReLU + fused (sem_seg | depth) heads, one batch elem.

    x_ref : (1, H, W, Cin)        bf16 input (unpadded)
    wc_ref: (9*Cin, Chid)         bf16 im2col conv weight, row = (kh*3+kw)*Cin + c
    bc_ref: (1, Chid)             f32 conv bias
    wh_ref: (Chid, HEAD_PAD)      bf16 fused head weight [sem_seg | depth | 0s]
    bh_ref: (1, HEAD_PAD)         f32 fused head bias
    o_ref : (1, H*W, HEAD_PAD)    f32 lane-dense fused output
    xp_ref: (H+2, W+2, Cin)       bf16 VMEM scratch for 'same' zero padding
    """
    H, W = x_ref.shape[1], x_ref.shape[2]

    # 1) 'same' zero padding done in-kernel (no jnp.pad HBM pass in the wrapper).
    xp_ref[...] = jnp.zeros_like(xp_ref)
    xp_ref[1:H + 1, 1:W + 1, :] = x_ref[0]
    xp = xp_ref[...]                                      # (H+2, W+2, Cin)

    # 2) im2col: one K = 9*Cin matmul instead of nine K = Cin taps.
    cols = [xp[kh:kh + H, kw:kw + W, :].reshape(H * W, -1)
            for kh in range(3) for kw in range(3)]
    patches = jnp.concatenate(cols, axis=-1)              # (H*W, 9*Cin) bf16

    feats = jnp.dot(patches, wc_ref[...],
                    preferred_element_type=jnp.float32)   # (H*W, Chid) f32 acc
    feats = jnp.maximum(feats + bc_ref[...], 0.0)         # bias + ReLU

    # 3) fused heads: single lane-dense matmul (Cout padded to 128).
    y = jnp.dot(feats.astype(jnp.bfloat16), wh_ref[...],
                preferred_element_type=jnp.float32) + bh_ref[...]
    o_ref[0] = y.astype(o_ref.dtype)                      # unmasked 128-lane store


def _btsnet_fused_call(x_nhwc, wc, bc, wh, bh):
    B, H, W, Cin = x_nhwc.shape
    Chid = wc.shape[-1]
    return pl.pallas_call(
        _btsnet_fused_kernel,
        out_shape=jax.ShapeDtypeStruct((B, H * W, HEAD_PAD), jnp.float32),
        grid_spec=pltpu.PrefetchScalarGridSpec(
            num_scalar_prefetch=0,
            grid=(B,),
            in_specs=[
                pl.BlockSpec((1, H, W, Cin), lambda b: (b, 0, 0, 0)),
                pl.BlockSpec((9 * Cin, Chid), lambda b: (0, 0)),
                pl.BlockSpec((1, Chid), lambda b: (0, 0)),
                pl.BlockSpec((Chid, HEAD_PAD), lambda b: (0, 0)),
                pl.BlockSpec((1, HEAD_PAD), lambda b: (0, 0)),
            ],
            out_specs=pl.BlockSpec((1, H * W, HEAD_PAD), lambda b: (b, 0, 0)),
            scratch_shapes=[pltpu.VMEM((H + 2, W + 2, Cin), jnp.bfloat16)],
        ),
        compiler_params=pltpu.CompilerParams(
            dimension_semantics=("parallel",)),
    )(x_nhwc, wc, bc, wh, bh)


# ------------------------------ forward wrapper ----------------------------- #

def btsnet_forward(x_nchw, params):
    """Equivalent of Net.forward: returns [sem_seg_out, depth_out] in NCHW."""
    x = jnp.transpose(x_nchw, (0, 2, 3, 1)).astype(jnp.bfloat16)   # NCHW -> NHWC
    B, H, W, Cin = x.shape
    chid = params["backbone_b"].shape[0]
    nclass = params["sem_seg_w"].shape[1]

    # im2col conv weight (9*Cin, Chid), bf16
    wc = params["backbone_w"].astype(jnp.bfloat16).reshape(9 * Cin, chid)
    bc = params["backbone_b"].reshape(1, chid).astype(jnp.float32)

    # fused, lane-padded head weights: columns [0:nclass] = sem_seg, [nclass] = depth
    wh = jnp.zeros((chid, HEAD_PAD), jnp.bfloat16)
    wh = wh.at[:, :nclass].set(params["sem_seg_w"].astype(jnp.bfloat16))
    wh = wh.at[:, nclass:nclass + 1].set(params["depth_w"].astype(jnp.bfloat16))
    bh = jnp.zeros((1, HEAD_PAD), jnp.float32)
    bh = bh.at[0, :nclass].set(params["sem_seg_b"])
    bh = bh.at[0, nclass:nclass + 1].set(params["depth_b"])

    y = _btsnet_fused_call(x, wc, bc, wh, bh)              # (B, H*W, 128) f32
    y = y.reshape(B, H, W, HEAD_PAD)

    sem_seg = jnp.transpose(y[..., :nclass], (0, 3, 1, 2))             # NCHW
    depth = jnp.transpose(y[..., nclass:nclass + 1], (0, 3, 1, 2))     # NCHW
    return [sem_seg, depth]


# ------------------------------- parameters -------------------------------- #

def init_params(key, cin=4, chid=32, num_classes=6):
    k1, k2, k3, k4, k5, k6 = jax.random.split(key, 6)
    return {
        # backbone 3x3 conv weight stored as (9, Cin, Chid) with row = kh*3+kw
        "backbone_w": 0.1 * jax.random.normal(k1, (9, cin, chid), jnp.float32),
        "backbone_b": 0.1 * jax.random.normal(k4, (chid,), jnp.float32),
        "sem_seg_w": 0.1 * jax.random.normal(k2, (chid, num_classes), jnp.float32),
        "sem_seg_b": 0.1 * jax.random.normal(k5, (num_classes,), jnp.float32),
        "depth_w": 0.1 * jax.random.normal(k3, (chid, 1), jnp.float32),
        "depth_b": 0.1 * jax.random.normal(k6, (1,), jnp.float32),
    }


# ------------------------------ reference check ----------------------------- #

def _reference_forward(x_nchw, params):
    # Pure-JAX reference mimicking the kernel's bf16 operand quantization
    # (products exact, f32 accumulation), so 1e-3-level tolerances are sound.
    x = jnp.transpose(x_nchw, (0, 2, 3, 1)).astype(jnp.bfloat16).astype(jnp.float32)
    cin = x.shape[-1]
    w = params["backbone_w"].astype(jnp.bfloat16).astype(jnp.float32)
    w_hwio = w.reshape(3, 3, cin, -1)
    feats = jax.lax.conv_general_dilated(
        x, w_hwio, window_strides=(1, 1), padding="SAME",
        dimension_numbers=("NHWC", "HWIO", "NHWC"),
        precision=jax.lax.Precision.HIGHEST)
    feats = jnp.maximum(feats + params["backbone_b"], 0.0)
    feats = feats.astype(jnp.bfloat16).astype(jnp.float32)   # kernel feeds bf16 feats
    outs = []
    for name in ("sem_seg", "depth"):
        wv = params[f"{name}_w"].astype(jnp.bfloat16).astype(jnp.float32)
        y = jnp.einsum("bhwc,co->bhwo", feats, wv,
                       precision=jax.lax.Precision.HIGHEST) + params[f"{name}_b"]
        outs.append(jnp.transpose(y, (0, 3, 1, 2)))
    return outs


# ----------------------------------- main ----------------------------------- #

if __name__ == "__main__":
    key = jax.random.PRNGKey(0)
    k_x, k_p = jax.random.split(key)

    # small NCHW input consistent with a conv backbone: batch=2, C=4, 16x16
    x = jax.random.normal(k_x, (2, 4, 16, 16), jnp.float32)
    params = init_params(k_p, cin=4, chid=32, num_classes=6)

    fwd = jax.jit(btsnet_forward)
    outs = fwd(x, params)
    outs = [jax.block_until_ready(o) for o in outs]

    refs = _reference_forward(x, params)
    for o, r in zip(outs, refs):
        assert o.shape == r.shape, (o.shape, r.shape)
        err = float(jnp.max(jnp.abs(o - r)))
        assert jnp.allclose(o, r, rtol=2e-3, atol=2e-3), f"max abs err {err}"

    print("KERNEL_OK")
</pallas_src>

<mosaic_0001>
module attributes {stable_mosaic.version = 11 : i64} {
  func.func @_btsnet_fused_kernel(%arg0: i32, %arg1: memref<1x16x16x4xbf16, #tpu.memory_space<vmem>>, %arg2: memref<36x32xbf16, #tpu.memory_space<vmem>>, %arg3: memref<1x32xf32, #tpu.memory_space<vmem>>, %arg4: memref<32x128xbf16, #tpu.memory_space<vmem>>, %arg5: memref<1x128xf32, #tpu.memory_space<vmem>>, %arg6: memref<1x256x128xf32, #tpu.memory_space<vmem>>, %arg7: memref<18x18x4xbf16, #tpu.memory_space<vmem>>) attributes {dimension_semantics = [#tpu.dimension_semantics<parallel>], iteration_bounds = array<i64: 2>, scalar_prefetch = 0 : i64, scratch_operands = 1 : i64, tpu.core_type = #tpu.core_type<tc>, window_params = [{transform_indices = @transform_0, window_bounds = array<i64: 1, 16, 16, 4>}, {pipeline_mode = #tpu.pipeline_mode<synchronous>, transform_indices = @transform_1, window_bounds = array<i64: 36, 32>}, {pipeline_mode = #tpu.pipeline_mode<synchronous>, transform_indices = @transform_2, window_bounds = array<i64: 1, 32>}, {pipeline_mode = #tpu.pipeline_mode<synchronous>, transform_indices = @transform_3, window_bounds = array<i64: 32, 128>}, {pipeline_mode = #tpu.pipeline_mode<synchronous>, transform_indices = @transform_4, window_bounds = array<i64: 1, 128>}, {transform_indices = @transform_5, window_bounds = array<i64: 1, 256, 128>}]} {
    %cst = arith.constant 0.000000e+00 : bf16
    %0 = vector.broadcast %cst : bf16 to vector<18x18x4xbf16>
    %c0 = arith.constant 0 : index
    %c0_0 = arith.constant 0 : index
    %c0_1 = arith.constant 0 : index
    %1 = vector.load %arg7[%c0, %c0_0, %c0_1] : memref<18x18x4xbf16, #tpu.memory_space<vmem>>, vector<18x18x4xbf16>
    tpu.vector_store %arg7[%c0, %c0_0, %c0_1], %0 {strides = array<i32>} : memref<18x18x4xbf16, #tpu.memory_space<vmem>>, vector<18x18x4xbf16>,
    %c0_2 = arith.constant 0 : index
    %c0_3 = arith.constant 0 : index
    %c0_4 = arith.constant 0 : index
    %c0_5 = arith.constant 0 : index
    %2 = vector.load %arg1[%c0_2, %c0_3, %c0_4, %c0_5] : memref<1x16x16x4xbf16, #tpu.memory_space<vmem>>, vector<1x16x16x4xbf16>
    %3 = vector.shape_cast %2 : vector<1x16x16x4xbf16> to vector<16x16x4xbf16>
    %c1 = arith.constant 1 : index
    %c1_6 = arith.constant 1 : index
    %c0_7 = arith.constant 0 : index
    %4 = vector.load %arg7[%c1, %c1_6, %c0_7] : memref<18x18x4xbf16, #tpu.memory_space<vmem>>, vector<16x16x4xbf16>
    tpu.vector_store %arg7[%c1, %c1_6, %c0_7], %3 {strides = array<i32>} : memref<18x18x4xbf16, #tpu.memory_space<vmem>>, vector<16x16x4xbf16>,
    %c0_8 = arith.constant 0 : index
    %c0_9 = arith.constant 0 : index
    %c0_10 = arith.constant 0 : index
    %5 = vector.load %arg7[%c0_8, %c0_9, %c0_10] : memref<18x18x4xbf16, #tpu.memory_space<vmem>>, vector<18x18x4xbf16>
    %6 = vector.extract_strided_slice %5 {offsets = [0, 0, 0], sizes = [16, 16, 4], strides = [1, 1, 1]} : vector<18x18x4xbf16> to vector<16x16x4xbf16>
    %7 = vector.shape_cast %6 : vector<16x16x4xbf16> to vector<256x4xbf16>
    %8 = vector.extract_strided_slice %5 {offsets = [0, 1, 0], sizes = [16, 16, 4], strides = [1, 1, 1]} : vector<18x18x4xbf16> to vector<16x16x4xbf16>
    %9 = vector.shape_cast %8 : vector<16x16x4xbf16> to vector<256x4xbf16>
    %10 = vector.extract_strided_slice %5 {offsets = [0, 2, 0], sizes = [16, 16, 4], strides = [1, 1, 1]} : vector<18x18x4xbf16> to vector<16x16x4xbf16>
    %11 = vector.shape_cast %10 : vector<16x16x4xbf16> to vector<256x4xbf16>
    %12 = vector.extract_strided_slice %5 {offsets = [1, 0, 0], sizes = [16, 16, 4], strides = [1, 1, 1]} : vector<18x18x4xbf16> to vector<16x16x4xbf16>
    %13 = vector.shape_cast %12 : vector<16x16x4xbf16> to vector<256x4xbf16>
    %14 = vector.extract_strided_slice %5 {offsets = [1, 1, 0], sizes = [16, 16, 4], strides = [1, 1, 1]} : vector<18x18x4xbf16> to vector<16x16x4xbf16>
    %15 = vector.shape_cast %14 : vector<16x16x4xbf16> to vector<256x4xbf16>
    %16 = vector.extract_strided_slice %5 {offsets = [1, 2, 0], sizes = [16, 16, 4], strides = [1, 1, 1]} : vector<18x18x4xbf16> to vector<16x16x4xbf16>
    %17 = vector.shape_cast %16 : vector<16x16x4xbf16> to vector<256x4xbf16>
    %18 = vector.extract_strided_slice %5 {offsets = [2, 0, 0], sizes = [16, 16, 4], strides = [1, 1, 1]} : vector<18x18x4xbf16> to vector<16x16x4xbf16>
    %19 = vector.shape_cast %18 : vector<16x16x4xbf16> to vector<256x4xbf16>
    %20 = vector.extract_strided_slice %5 {offsets = [2, 1, 0], sizes = [16, 16, 4], strides = [1, 1, 1]} : vector<18x18x4xbf16> to vector<16x16x4xbf16>
    %21 = vector.shape_cast %20 : vector<16x16x4xbf16> to vector<256x4xbf16>
    %22 = vector.extract_strided_slice %5 {offsets = [2, 2, 0], sizes = [16, 16, 4], strides = [1, 1, 1]} : vector<18x18x4xbf16> to vector<16x16x4xbf16>
    %23 = vector.shape_cast %22 : vector<16x16x4xbf16> to vector<256x4xbf16>
    %24 = tpu.concatenate %7, %9, %11, %13, %15, %17, %19, %21, %23 in 1 : vector<256x4xbf16>, vector<256x4xbf16>, vector<256x4xbf16>, vector<256x4xbf16>, vector<256x4xbf16>, vector<256x4xbf16>, vector<256x4xbf16>, vector<256x4xbf16>, vector<256x4xbf16> -> vector<256x36xbf16>
    %c0_11 = arith.constant 0 : index
    %c0_12 = arith.constant 0 : index
    %25 = vector.load %arg2[%c0_11, %c0_12] : memref<36x32xbf16, #tpu.memory_space<vmem>>, vector<36x32xbf16>
    %cst_13 = arith.constant dense<0.000000e+00> : vector<256x32xf32>
    %26 = tpu.matmul %24, %25, %cst_13 {dimension_numbers = #tpu.dot_dimension_numbers<[1], [0], [0], [1], [0, 0, 1, 1], [], []>} : vector<256x36xbf16>, vector<36x32xbf16>, vector<256x32xf32> -> vector<256x32xf32>
    %c0_14 = arith.constant 0 : index
    %c0_15 = arith.constant 0 : index
    %27 = vector.load %arg3[%c0_14, %c0_15] : memref<1x32xf32, #tpu.memory_space<vmem>>, vector<1x32xf32>
    %28 = vector.broadcast %27 : vector<1x32xf32> to vector<256x32xf32>
    %29 = arith.addf %26, %28 : vector<256x32xf32>
    %cst_16 = arith.constant 0.000000e+00 : f32
    %30 = vector.broadcast %cst_16 : f32 to vector<256x32xf32>
    %31 = arith.maximumf %29, %30 : vector<256x32xf32>
    %32 = arith.truncf %31 : vector<256x32xf32> to vector<256x32xbf16>
    %c0_17 = arith.constant 0 : index
    %c0_18 = arith.constant 0 : index
    %33 = vector.load %arg4[%c0_17, %c0_18] : memref<32x128xbf16, #tpu.memory_space<vmem>>, vector<32x128xbf16>
    %cst_19 = arith.constant dense<0.000000e+00> : vector<256x128xf32>
    %34 = tpu.matmul %32, %33, %cst_19 {dimension_numbers = #tpu.dot_dimension_numbers<[1], [0], [0], [1], [0, 0, 1, 1], [], []>} : vector<256x32xbf16>, vector<32x128xbf16>, vector<256x128xf32> -> vector<256x128xf32>
    %c0_20 = arith.constant 0 : index
    %c0_21 = arith.constant 0 : index
    %35 = vector.load %arg5[%c0_20, %c0_21] : memref<1x128xf32, #tpu.memory_space<vmem>>, vector<1x128xf32>
    %36 = vector.broadcast %35 : vector<1x128xf32> to vector<256x128xf32>
    %37 = arith.addf %34, %36 : vector<256x128xf32>
    %c0_22 = arith.constant 0 : index
    %c0_23 = arith.constant 0 : index
    %c0_24 = arith.constant 0 : index
    %38 = vector.load %arg6[%c0_22, %c0_23, %c0_24] : memref<1x256x128xf32, #tpu.memory_space<vmem>>, vector<1x256x128xf32>
    %39 = vector.shape_cast %38 : vector<1x256x128xf32> to vector<256x128xf32>
    %40 = vector.shape_cast %37 : vector<256x128xf32> to vector<1x256x128xf32>
    tpu.vector_store %arg6[%c0_22, %c0_23, %c0_24], %40 {strides = array<i32>} : memref<1x256x128xf32, #tpu.memory_space<vmem>>, vector<1x256x128xf32>,
    return
  }
  func.func @transform_0(%arg0: i32) -> (i32, i32, i32, i32) {
    %c0_i32 = arith.constant 0 : i32
    %c0_i32_0 = arith.constant 0 : i32
    %c0_i32_1 = arith.constant 0 : i32
    %c0_i32_2 = arith.constant 0 : i32
    return %arg0, %c0_i32, %c0_i32_0, %c0_i32_1 : i32, i32, i32, i32
  }
  func.func @transform_1(%arg0: i32) -> (i32, i32) {
    %c0_i32 = arith.constant 0 : i32
    %c0_i32_0 = arith.constant 0 : i32
    %c0_i32_1 = arith.constant 0 : i32
    return %c0_i32, %c0_i32_0 : i32, i32
  }
  func.func @transform_2(%arg0: i32) -> (i32, i32) {
    %c0_i32 = arith.constant 0 : i32
    %c0_i32_0 = arith.constant 0 : i32
    %c0_i32_1 = arith.constant 0 : i32
    return %c0_i32, %c0_i32_0 : i32, i32
  }
  func.func @transform_3(%arg0: i32) -> (i32, i32) {
    %c0_i32 = arith.constant 0 : i32
    %c0_i32_0 = arith.constant 0 : i32
    %c0_i32_1 = arith.constant 0 : i32
    return %c0_i32, %c0_i32_0 : i32, i32
  }
  func.func @transform_4(%arg0: i32) -> (i32, i32) {
    %c0_i32 = arith.constant 0 : i32
    %c0_i32_0 = arith.constant 0 : i32
    %c0_i32_1 = arith.constant 0 : i32
    return %c0_i32, %c0_i32_0 : i32, i32
  }
  func.func @transform_5(%arg0: i32) -> (i32, i32, i32) {
    %c0_i32 = arith.constant 0 : i32
    %c0_i32_0 = arith.constant 0 : i32
    %c0_i32_1 = arith.constant 0 : i32
    return %arg0, %c0_i32, %c0_i32_0 : i32, i32, i32
  }
}

</mosaic_0001>

<bundles_post_ra>
// kernel: btsnet_forward.1
= control target key start
LH: loop header
LB: loop body
LE: loop exit
PB: predicated region body
PF: predicated region fallthrough
CT: control target
= control target key end

     0   :  { %s3039_s18 = smov 0   ;;  %s4404_s0 = inlined_call_operand.vmem [shape: bf16[2,16,16,4], index: 0, kind: input, shape index: {}]   ;;  %s4405_s1 = inlined_call_operand.vmem [shape: bf16[36,32], index: 1, kind: input, shape index: {}]   ;;  %s4406_s2 = inlined_call_operand.vmem [shape: f32[1,32], index: 2, kind: input, shape index: {}]   ;;  %s4407_s3 = inlined_call_operand.vmem [shape: bf16[32,128], index: 3, kind: input, shape index: {}]   ;;  %s4408_s4 = inlined_call_operand.vmem [shape: f32[1,128], index: 4, kind: input, shape index: {}]   ;;  %s4409_s5 = inlined_call_operand.vmem [shape: f32[2,256,128], index: 5, kind: output, shape index: {}]  }
   0x1 LB: > { %s2717_s19 = sadd.s32 4294967295, %s2998_s18   ;;  %p2721_p0 = scmp.ge.s32.totalorder %s2998_s18, 1  ;;  %s2998_s18 = sphi %s3039_s18, %s15_s18  }
   0x2   : > { %p187_p1 = scmp.lt.s32.totalorder %s2998_s18, 3 }
   0x4   : > { %p188_p2 = pnand %p2721_p0, %p187_p1 }
   0x5   : > { %vm226_vm0 = vcmask (!%p188_p2), 27648   ;;  %vm229_vm1 = vcmask (!%p188_p2), 24576   ;;  %v3000_v0 = vmov (!%p188_p2), 0   ;;  %p215_p3 = scmp.lt.s32.totalorder (!%p188_p2), %s2717_s19, 1  ;;  %vm1244_vm2 = vcmask (!%p188_p2), 1042432   ;;  %s3001_s24 = smov (!%p188_p2), 8  }
   0x6   : > { %191 = sbr.rel (%p188_p2) target bundleno = 857 (0x359), region = 40  ;;  %227 = vst.msk [vmem:[#allocation2] sm:$0xf] (!%p188_p2), %vm226_vm0, %v3000_v0  ;;  %228 = vst.msk [vmem:[#allocation2 + $0x4] sm:$0xf] (!%p188_p2), %vm226_vm0, %v3000_v0  ;;  %vm1245_vm3 = vcmask (!%p188_p2), 1046532  }
   0x7   : > { %230 = vst.msk [vmem:[#allocation2 + $0x8] sm:$0x1] (!%p188_p2), %vm229_vm1, %v3000_v0  ;;  %233 = vst.msk [vmem:[#allocation2 + $0x14] sm:$0x1] (!%p188_p2), %vm229_vm1, %v3000_v0  ;;  %vm809_vm4 = vsmask.f32 (!%p188_p2), 3328 }
   0x8   : > { %231 = vst.msk [vmem:[#allocation2 + $0xc] sm:$0xf] (!%p188_p2), %vm226_vm0, %v3000_v0  ;;  %232 = vst.msk [vmem:[#allocation2 + $0x10] sm:$0xf] (!%p188_p2), %vm226_vm0, %v3000_v0  ;;  %vm810_vm5 = vsmask.f32 (!%p188_p2), 7440 }
   0x9   : > { %234 = vst.msk [vmem:[#allocation2 + $0x18] sm:$0xf] (!%p188_p2), %vm226_vm0, %v3000_v0  ;;  %235 = vst.msk [vmem:[#allocation2 + $0x1c] sm:$0xf] (!%p188_p2), %vm226_vm0, %v3000_v0  ;;  %vm314_vm6 = vsmask.f32 (!%p188_p2), 256 }
   0xa   : > { %236 = vst.msk [vmem:[#allocation2 + $0x20] sm:$0x1] (!%p188_p2), %vm229_vm1, %v3000_v0  ;;  %239 = vst.msk [vmem:[#allocation2 + $0x2c] sm:$0x1] (!%p188_p2), %vm229_vm1, %v3000_v0  ;;  %vm315_vm8 = vsmask.f32 (!%p188_p2), 4368 }
   0xb   : > { %237 = vst.msk [vmem:[#allocation2 + $0x24] sm:$0xf] (!%p188_p2), %vm226_vm0, %v3000_v0  ;;  %238 = vst.msk [vmem:[#allocation2 + $0x28] sm:$0xf] (!%p188_p2), %vm226_vm0, %v3000_v0  ;;  %vm639_vm9 = vsmask.f32 (!%p188_p2), 7938 }
   0xc   : > { %240 = vst.msk [vmem:[#allocation2 + $0x30] sm:$0xf] (!%p188_p2), %vm226_vm0, %v3000_v0  ;;  %241 = vst.msk [vmem:[#allocation2 + $0x34] sm:$0xf] (!%p188_p2), %vm226_vm0, %v3000_v0  ;;  %s3002_s25 = smov (!%p188_p2), 4   ;;  %s3003_s26 = smov (!%p188_p2), 12  }
   0xd   : > { %242 = vst.msk [vmem:[#allocation2 + $0x38] sm:$0x1] %vm229_vm1, %v3000_v0  ;;  %245 = vst.msk [vmem:[#allocation2 + $0x44] sm:$0x1] %vm229_vm1, %v3000_v0  ;;  %s4421_s19 = smov (!%p215_p3, %s2717_s19), 1  ;;  %s3004_s27 = smov 24  }
   0xe   : > { %243 = vst.msk [vmem:[#allocation2 + $0x3c] sm:$0xf] %vm226_vm0, %v3000_v0  ;;  %244 = vst.msk [vmem:[#allocation2 + $0x40] sm:$0xf] %vm226_vm0, %v3000_v0  ;;  %s2839_s20 = sshll.u32 %s4421_s19, 7  ;;  %s3005_s30 = smov 20  }
   0xf   : > { %246 = vst.msk [vmem:[#allocation2 + $0x48] sm:$0xf] %vm226_vm0, %v3000_v0  ;;  %247 = vst.msk [vmem:[#allocation2 + $0x4c] sm:$0xf] %vm226_vm0, %v3000_v0  ;;  %s3111_s23 = scalar_lea.vmem %s4404_s0, %s2839_s20  ;;  %v3118_v3 = vld [vmem:[#allocation2] sm:$0xf] }
  0x10   : > { %248 = vst.msk [vmem:[#allocation2 + $0x50] sm:$0x1] %vm229_vm1, %v3000_v0  ;;  %251 = vst.msk [vmem:[#allocation2 + $0x5c] sm:$0x1] %vm229_vm1, %v3000_v0  ;;  %v284_v2 = vld [vmem:[%s3111_s23 + $0x8] sm:$0xf] }
  0x11   : > { %249 = vst.msk [vmem:[#allocation2 + $0x54] sm:$0xf] %vm226_vm0, %v3000_v0  ;;  %250 = vst.msk [vmem:[#allocation2 + $0x58] sm:$0xf] %vm226_vm0, %v3000_v0  ;;  %v3120_v4 = vld [vmem:[#allocation2 + $0x4] sm:$0xf] }
  0x12   : > { %252 = vst.msk [vmem:[#allocation2 + $0x60] sm:$0xf] %vm226_vm0, %v3000_v0  ;;  %253 = vst.msk [vmem:[#allocation2 + $0x64] sm:$0xf] %vm226_vm0, %v3000_v0  ;;  %v757_v5 = vld [vmem:[#allocation2 + $0x8] sm:$0x1] }
  0x13   : > { %254 = vst.msk [vmem:[#allocation2 + $0x68] sm:$0x1] %vm229_vm1, %v3000_v0  ;;  %257 = vst.msk [vmem:[#allocation2 + $0x74] sm:$0x1] %vm229_vm1, %v3000_v0  ;;  %v2726_v6 = vrot.slane %v3118_v3, 9  ;;  %v1249_v7 = vrot.slane %v3120_v4, 5 }
  0x14   : > { %255 = vst.msk [vmem:[#allocation2 + $0x6c] sm:$0xf] %vm226_vm0, %v3000_v0  ;;  %256 = vst.msk [vmem:[#allocation2 + $0x70] sm:$0xf] %vm226_vm0, %v3000_v0  ;;  %v1252_v8 = vrot.slane %v757_v5, 5  ;;  %v813_v9 = vshrl.u32 %v3118_v3, 16 }
  0x15   : > { %258 = vst.msk [vmem:[#allocation2 + $0x78] sm:$0xf] %vm226_vm0, %v3000_v0  ;;  %259 = vst.msk [vmem:[#allocation2 + $0x7c] sm:$0xf] %vm226_vm0, %v3000_v0  ;;  %v816_v10 = vshll.u32 %v3118_v3, 16  ;;  %v822_v11 = vshll.u32 %v3120_v4, 16 }
  0x16   : > { %260 = vst.msk [vmem:[#allocation2 + $0x80] sm:$0x1] %vm229_vm1, %v3000_v0  ;;  %263 = vst.msk [vmem:[#allocation2 + $0x8c] sm:$0x1] %vm229_vm1, %v3000_v0  ;;  %v826_v12 = vshrl.u32 %v3120_v4, 16  ;;  %v832_v13 = vshll.u32 %v757_v5, 16 }
  0x17   : > { %261 = vst.msk [vmem:[#allocation2 + $0x84] sm:$0xf] %vm226_vm0, %v3000_v0  ;;  %262 = vst.msk [vmem:[#allocation2 + $0x88] sm:$0xf] %vm226_vm0, %v3000_v0  ;;  %v285_v14 = vld [vmem:[%s3111_s23 + $0xc] sm:$0xf] }
  0x18   : > { %264 = vst.msk [vmem:[#allocation2 + $0x90] sm:$0xf] %vm226_vm0, %v3000_v0  ;;  %265 = vst.msk [vmem:[#allocation2 + $0x94] sm:$0xf] %vm226_vm0, %v3000_v0  ;;  %v1251_v16 = vrot.slane %v1249_v7, 4  ;;  %v815_v17 = vrot.slane %v813_v9, 4 }
  0x19   : > { %266 = vst.msk [vmem:[#allocation2 + $0x98] sm:$0x1] %vm229_vm1, %v3000_v0  ;;  %269 = vst.msk [vmem:[#allocation2 + $0xa4] sm:$0x1] %vm229_vm1, %v3000_v0  ;;  %v335_v18 = vshrl.u32 %v284_v2, 16  ;;  %v818_v19 = vrot.slane %v816_v10, 5 }
  0x1a   : > { %267 = vst.msk [vmem:[#allocation2 + $0x9c] sm:$0xf] %vm226_vm0, %v3000_v0  ;;  %268 = vst.msk [vmem:[#allocation2 + $0xa0] sm:$0xf] %vm226_vm0, %v3000_v0  ;;  %v824_v20 = vrot.slane %v822_v11, 5  ;;  %v828_v21 = vrot.slane %v826_v12, 4 }
  0x1b   : > { %270 = vst.msk [vmem:[#allocation2 + $0xa8] sm:$0xf] %vm226_vm0, %v3000_v0  ;;  %271 = vst.msk [vmem:[#allocation2 + $0xac] sm:$0xf] %vm226_vm0, %v3000_v0  ;;  %v834_v22 = vrot.slane %v832_v13, 5  ;;  %v337_v25 = vrot.slane %v335_v18, 7  ;;  %v819_v30 = vor.u32 %v818_v19, %v815_v17 }
  0x1c   : > { %272 = vst.msk [vmem:[#allocation2 + $0xb0] sm:$0x1] %vm229_vm1, %v3000_v0  ;;  %275 = vst.msk [vmem:[#allocation2 + $0xbc] sm:$0x1] %vm229_vm1, %v3000_v0  ;;  %v282_v23 = vld [vmem:[%s3111_s23] sm:$0xf]  ;;  %v829_v31 = vor.u32 %v828_v21, %v824_v20 }
  0x1d   : > { %273 = vst.msk [vmem:[#allocation2 + $0xb4] sm:$0xf] %vm226_vm0, %v3000_v0  ;;  %274 = vst.msk [vmem:[#allocation2 + $0xb8] sm:$0xf] %vm226_vm0, %v3000_v0  ;;  %v338_v26 = vshll.u32 %v284_v2, 16  ;;  %v343_v27 = vshrl.u32 %v285_v14, 16 }
  0x1e   : > { %276 = vst.msk [vmem:[#allocation2 + $0xc0] sm:$0xf] %vm226_vm0, %v3000_v0  ;;  %277 = vst.msk [vmem:[#allocation2 + $0xc4] sm:$0xf] %vm226_vm0, %v3000_v0  ;;  %v283_v28 = vld [vmem:[%s3111_s23 + $0x4] sm:$0xf] }
  0x1f   : > { %278 = vst.msk [vmem:[#allocation2 + $0xc8] sm:$0x1] %vm229_vm1, %v3000_v0  ;;  %281 = vst.msk [vmem:[#allocation2 + $0xd4] sm:$0x1] %vm229_vm1, %v3000_v0  ;;  %v346_v32 = vshll.u32 %v285_v14, 16  ;;  %v340_v36 = vor.u32 %v338_v26, %v337_v25  ;;  %v341_v37 = vrot.slane %v337_v25, 4 }
  0x20   : > { %279 = vst.msk [vmem:[#allocation2 + $0xcc] sm:$0xf] %vm226_vm0, %v3000_v0  ;;  %280 = vst.msk [vmem:[#allocation2 + $0xd0] sm:$0xf] %vm226_vm0, %v3000_v0  ;;  %v650_v34 = vld [vmem:[#allocation2 + $0x18] sm:$0xf] }
  0x21   : > { %vm3113_vm7 = vmor %vm1244_vm2, %vm1245_vm3  ;;  %v345_v38 = vrot.slane %v343_v27, 7  ;;  %v318_v39 = vshrl.u32 %v282_v23, 16  ;;  %v286_v40 = vld [vmem:[%s3111_s23 + $0x10] sm:$0xf]  ;;  %v820_v41 = vrot.slane %v819_v30, 4  ;;  %v830_v42 = vrot.slane %v829_v31, 4 }
  0x22   : > { %v1250_v15 = vsel %vm3113_vm7, %v2726_v6, %v1249_v7  ;;  %v1253_v24 = vsel %vm3113_vm7, %v1251_v16, %v1252_v8  ;;  %vm3137_vm10 = vmand %vm226_vm0, %vm639_vm9  ;;  %v321_v44 = vshll.u32 %v282_v23, 16  ;;  %v326_v45 = vshrl.u32 %v283_v28, 16  ;;  %v287_v50 = vld [vmem:[%s3111_s23 + $0x14] sm:$0xf]  ;;  %v641_v54 = vld [vmem:[#allocation2 + $0xc] sm:$0xf] }
  0x23   : > { %v2776_v29 = vcombine.low %v1250_v15, %v1253_v24  ;;  %vm3143_vm11 = vmor %vm809_vm4, %vm810_vm5  ;;  %v348_v46 = vor.u32 %v346_v32, %v345_v38  ;;  %v651_v47 = vsel %vm3137_vm10, %v340_v36, %v650_v34  ;;  %v320_v48 = vrot.slane %v318_v39, 7  ;;  %v657_v60 = vld [vmem:[#allocation2 + $0x24] sm:$0xf]  ;;  %v647_v61 = vld [vmem:[#allocation2 + $0x14] sm:$0x1]  ;;  %s3006_s8 = smov 32  }
  0x24   : > { %vm3151_vm12 = vmor %vm314_vm6, %vm315_vm8  ;;  %v329_v49 = vshll.u32 %v283_v28, 16  ;;  %v825_v51 = vsel %vm3143_vm11, %v820_v41, %v824_v20  ;;  %v835_v52 = vsel %vm3143_vm11, %v830_v42, %v834_v22  ;;  %652 = vst [vmem:[#allocation2 + $0x18] sm:$0xf] %v651_v47  ;;  %v328_v53 = vrot.slane %v326_v45, 7  ;;  %v654_v62 = vld [vmem:[#allocation2 + $0x20] sm:$0x1] }
  0x25   : > { %1603 = vrot.lane.b32.xlu1 %v2776_v29, %s3001_s24  ;;  %v352_v55 = vshrl.u32 %v286_v40, 16  ;;  %v2760_v56 = vcombine.low %v825_v51, %v835_v52  ;;  %v349_v57 = vsel %vm3151_vm12, %v341_v37, %v348_v46  ;;  %v323_v58 = vor.u32 %v321_v44, %v320_v48  ;;  %vm3166_vm13 = vmand %vm229_vm1, %vm314_vm6  ;;  %v288_v7 = vld [vmem:[%s3111_s23 + $0x18] sm:$0xf]  ;;  %v289_v12 = vld [vmem:[%s3111_s23 + $0x1c] sm:$0xf]  ;;  %s3007_s9 = smov 16  }
  0x26   : > { %v324_v59 = vrot.slane %v320_v48, 4  ;;  %653 = vst.msk [vmem:[#allocation2 + $0x1c] sm:$0xf] %vm226_vm0, %v349_v57  ;;  %v331_v0 = vor.u32 %v329_v49, %v328_v53  ;;  %v355_v5 = vshll.u32 %v286_v40, 16  ;;  %v360_v6 = vshrl.u32 %v287_v50, 16  ;;  %s3008_s10 = smov 28  }
  0x27   : > { %v354_v2 = vrot.slane %v352_v55, 7  ;;  %1523 = vrot.lane.b32.xlu0 %v2760_v56, %s3002_s25  ;;  %v642_v8 = vsel %vm3137_vm10, %v323_v58, %v641_v54  ;;  %v363_v9 = vshll.u32 %v287_v50, 16  ;;  %v333_v10 = vrot.slane %v328_v53, 4  ;;  %v661_v24 = vld [vmem:[#allocation2 + $0x2c] sm:$0x1]  ;;  %s2840_s21 = sshll.u32 %s4421_s19, 8 }
  0x28   : > { %v350_v11 = vrot.slane %v345_v38, 4  ;;  %v332_v13 = vsel %vm3151_vm12, %v324_v59, %v331_v0  ;;  %643 = vst [vmem:[#allocation2 + $0xc] sm:$0xf] %v642_v8  ;;  %v362_v16 = vrot.slane %v360_v6, 7  ;;  %v369_v19 = vshrl.u32 %v288_v7, 16 }
  0x29   : > { %v357_v14 = vor.u32 %v355_v5, %v354_v2  ;;  %v358_v15 = vrot.slane %v354_v2, 4  ;;  %644 = vst.msk [vmem:[#allocation2 + $0x10] sm:$0xf] %vm226_vm0, %v332_v13  ;;  %v648_v17 = vsel %vm3166_vm13, %v333_v10, %v647_v61  ;;  %v372_v20 = vshll.u32 %v288_v7, 16  ;;  %v664_v32 = vld [vmem:[#allocation2 + $0x30] sm:$0xf] }
  0x2a   : > { %v655_v18 = vsel %vm3166_vm13, %v350_v11, %v654_v62  ;;  %v365_v21 = vor.u32 %v363_v9, %v362_v16  ;;  %649 = vst [vmem:[#allocation2 + $0x14] sm:$0x1] %v648_v17  ;;  %v367_v23 = vrot.slane %v362_v16, 4  ;;  %v377_v25 = vshrl.u32 %v289_v12, 16 }
  0x2b   : > { %v658_v22 = vsel %vm3137_vm10, %v357_v14, %v657_v60  ;;  %656 = vst [vmem:[#allocation2 + $0x20] sm:$0x1] %v655_v18  ;;  %v761_v26 = vld [vmem:[#allocation2 + $0x18] sm:$0xf]  ;;  %v3185_v27 = vrot.slane %v369_v19, 7  ;;  %v380_v31 = vshll.u32 %v289_v12, 16 }
  0x2c   : > { %659 = vst [vmem:[#allocation2 + $0x24] sm:$0xf] %v658_v22  ;;  %v861_v28 = vshrl.u32 %v761_v26, 16  ;;  %v864_v29 = vshll.u32 %v761_v26, 16  ;;  %v366_v30 = vsel %vm3151_vm12, %v358_v15, %v365_v21  ;;  %v662_v36 = vsel %vm3166_vm13, %v367_v23, %v661_v24 }
  0x2d   : > { %v762_v34 = vld [vmem:[#allocation2 + $0x1c] sm:$0xf]  ;;  %660 = vst.msk [vmem:[#allocation2 + $0x28] sm:$0xf] %vm226_vm0, %v366_v30  ;;  %v374_v37 = vor.u32 %v372_v20, %v3185_v27  ;;  %v3193_v38 = vrot.slane %v377_v25, 7  ;;  %v2728_v40 = vrot.slane %v761_v26, 9 }
  0x2e   : > { %v3195_v39 = vcombine.low %v761_v26, %v762_v34  ;;  %v1263_v41 = vrot.slane %v762_v34, 5  ;;  %663 = vst [vmem:[#allocation2 + $0x2c] sm:$0x1] %v662_v36  ;;  %v863_v42 = vrot.slane %v861_v28, 4  ;;  %v866_v45 = vrot.slane %v864_v29, 5  ;;  %v2980_v28 = vld [vmem:[%s4405_s1] sm:$0xff]  }
  0x2f   : > { %v3197_v44 = vld [vmem:[#allocation2 + $0xc] sm:$0xf]  ;;  %v870_v46 = vshll.u32 %v762_v34, 16  ;;  %v375_v47 = vrot.slane %v3185_v27, 4  ;;  %v665_v48 = vsel %vm3137_vm10, %v374_v37, %v664_v32  ;;  %v874_v49 = vshrl.u32 %v762_v34, 16  ;;  %2878 = vmatprep.subr.bf16.mxu0 %v2980_v28 }
  0x30   : > { %1640 = vrot.lane.b32.xlu1 %v3195_v39, %s3003_s26  ;;  %v3204_v50 = vld [vmem:[#allocation2 + $0x10] sm:$0xf]  ;;  %v837_v51 = vshrl.u32 %v3197_v44, 16  ;;  %v2727_v52 = vrot.slane %v3197_v44, 9  ;;  %v3209_v53 = vor.u32 %v380_v31, %v3193_v38  ;;  %666 = vst [vmem:[#allocation2 + $0x30] sm:$0xf] %v665_v48  ;;  %v867_v59 = vor.u32 %v866_v45, %v863_v42  ;;  %2879 = vmatpush3.bf16.msra.mxu0 %v2980_v28 }
  0x31   : > { %v3213_v54 = vcombine.low %v3197_v44, %v3204_v50  ;;  %v840_v55 = vshll.u32 %v3197_v44, 16  ;;  %v3216_v56 = vld [vmem:[#allocation2 + $0x14] sm:$0x1]  ;;  %v1256_v57 = vrot.slane %v3204_v50, 5  ;;  %v1265_v62 = vrot.slane %v1263_v41, 4 }
  0x32   : > { %v763_v58 = vld [vmem:[#allocation2 + $0x20] sm:$0x1]  ;;  %v1259_v61 = vrot.slane %v3216_v56, 5  ;;  %v3220_v2 = vrot.slane %v870_v46, 5  ;;  %v850_v9 = vshrl.u32 %v3204_v50, 16  ;;  %v1264_v11 = vsel %vm3113_vm7, %v2728_v40, %v1263_v41 }
  0x33   : > { %v764_v60 = vld [vmem:[#allocation2 + $0x24] sm:$0xf]  ;;  %v1266_v0 = vrot.slane %v763_v58, 5  ;;  %1638 = vrot.lane.b32.xlu0 %v3213_v54, %s3003_s26  ;;  %v1257_v7 = vsel %vm3113_vm7, %v2727_v52, %v1256_v57  ;;  %v1258_v8 = vrot.slane %v1256_v57, 4  ;;  %v876_v13 = vrot.slane %v874_v49, 4 }
  0x34   : > { %v885_v5 = vshrl.u32 %v764_v60, 16  ;;  %v888_v6 = vshll.u32 %v764_v60, 16  ;;  %v765_v10 = vld [vmem:[#allocation2 + $0x28] sm:$0xf]  ;;  %v2729_v18 = vrot.slane %v764_v60, 9  ;;  %v868_v22 = vrot.slane %v867_v59, 4 }
  0x35   : > { %v1267_v12 = vsel %vm3113_vm7, %v1265_v62, %v1266_v0  ;;  %v898_v14 = vshrl.u32 %v765_v10, 16  ;;  %v3231_v15 = vcombine.low %v764_v60, %v765_v10  ;;  %v1260_v16 = vsel %vm3113_vm7, %v1258_v8, %v1259_v61  ;;  %v766_v17 = vld [vmem:[#allocation2 + $0x2c] sm:$0x1]  ;;  %v290_v46 = vld [vmem:[%s3111_s23 + $0x20] sm:$0xf] }
  0x36   : > { %v2777_v19 = vcombine.low %v1257_v7, %v1260_v16  ;;  %v1270_v20 = vrot.slane %v765_v10, 5  ;;  %v1273_v21 = vrot.slane %v766_v17, 5  ;;  %v877_v23 = vor.u32 %v876_v13, %v3220_v2  ;;  %v668_v60 = vld [vmem:[#allocation2 + $0x38] sm:$0x1]  ;;  %v2981_v61 = vld [vmem:[%s4405_s1 + $0x8] sm:$0xff]  }
  0x37   : > { %1745 = vrot.lane.b32.xlu1 %v3231_v15, %s3004_s27  ;;  %1743 = vrot.lane.b32.xlu0 %v3195_v39, %s3004_s27  ;;  %v880_v24 = vshll.u32 %v763_v58, 16  ;;  %v887_v25 = vrot.slane %v885_v5, 4  ;;  %v890_v26 = vrot.slane %v888_v6, 5  ;;  %v3243_v29 = vcombine.low %v1264_v11, %v1267_v12  ;;  %v291_v5 = vld [vmem:[%s3111_s23 + $0x24] sm:$0xf] }
  0x38   : > { %v1272_v30 = vrot.slane %v1270_v20, 4  ;;  %v894_v31 = vshll.u32 %v765_v10, 16  ;;  %v900_v32 = vrot.slane %v898_v14, 4  ;;  %v878_v34 = vrot.slane %v877_v23, 4  ;;  %v3269_v10 = vld [vmem:[#allocation2 + $0x30] sm:$0xf]  ;;  %2880 = vmatprep.subr.bf16.mxu0 %v2981_v61 }
  0x39   : > { %v882_v36 = vrot.slane %v880_v24, 5  ;;  %v891_v37 = vor.u32 %v890_v26, %v887_v25  ;;  %v904_v40 = vshll.u32 %v766_v17, 16  ;;  %v873_v41 = vsel %vm3143_vm11, %v868_v22, %v3220_v2  ;;  %2881 = vmatpush3.bf16.msra.mxu0 %v2981_v61  ;;  %v293_v23 = vld [vmem:[%s3111_s23 + $0x2c] sm:$0xf] }
  0x3a   : > { %v896_v42 = vrot.slane %v894_v31, 5  ;;  %v839_v44 = vrot.slane %v837_v51, 4  ;;  %v842_v45 = vrot.slane %v840_v55, 5  ;;  %v1271_v48 = vsel %vm3113_vm7, %v2729_v18, %v1270_v20 }
  0x3b   : > { %1708 = vrot.lane.b32.xlu0 %v2777_v19, %s3005_s30  ;;  %1605 = vrot.lane.b32.xlu1 %v2777_v19, %s3001_s24  ;;  %v1274_v49 = vsel %vm3113_vm7, %v1272_v30, %v1273_v21  ;;  %v883_v52 = vsel %vm3143_vm11, %v878_v34, %v882_v36  ;;  %v892_v57 = vrot.slane %v891_v37, 4  ;;  %v906_v55 = vrot.slane %v904_v40, 5  ;;  %v671_v19 = vld [vmem:[#allocation2 + $0x3c] sm:$0xf] }
  0x3c   : > { %v901_v51 = vor.u32 %v900_v32, %v896_v42  ;;  %v843_v58 = vor.u32 %v842_v45, %v839_v44  ;;  %v846_v59 = vshll.u32 %v3204_v50, 16  ;;  %v852_v62 = vrot.slane %v850_v9, 4  ;;  %v292_v9 = vld [vmem:[%s3111_s23 + $0x28] sm:$0xf] }
  0x3d   : > { %v856_v0 = vshll.u32 %v3216_v56, 16  ;;  %v383_v2 = vsel %vm3151_vm12, %v375_v47, %v3209_v53  ;;  %v386_v6 = vshrl.u32 %v290_v46, 16  ;;  %v3275_v27 = vcombine.low %v1271_v48, %v1274_v49 }
  0x3e   : > { %v902_v7 = vrot.slane %v901_v51, 4  ;;  %v844_v8 = vrot.slane %v843_v58, 4  ;;  %v848_v50 = vrot.slane %v846_v59, 5  ;;  %667 = vst.msk [vmem:[#allocation2 + $0x34] sm:$0xf] %vm226_vm0, %v383_v2  ;;  %v3277_v47 = vcombine.low %v873_v41, %v883_v52 }
  0x3f   : > { %1813 = vrot.lane.b32.xlu0 %v3243_v29, %s3006_s8  ;;  %1710 = vrot.lane.b32.xlu1 %v3243_v29, %s3005_s30  ;;  %v384_v53 = vrot.slane %v3193_v38, 4  ;;  %v389_v56 = vshll.u32 %v290_v46, 16  ;;  %v897_v11 = vsel %vm3143_vm11, %v892_v57, %v896_v42  ;;  %v858_v14 = vrot.slane %v856_v0, 5  ;;  %v675_v42 = vld [vmem:[#allocation2 + $0x44] sm:$0x1] }
  0x40   : > { %v907_v12 = vsel %vm3143_vm11, %v902_v7, %v906_v55  ;;  %v853_v13 = vor.u32 %v852_v62, %v848_v50  ;;  %v909_v16 = vshrl.u32 %v3269_v10, 16  ;;  %v912_v17 = vshll.u32 %v3269_v10, 16  ;;  %v678_v52 = vld [vmem:[#allocation2 + $0x48] sm:$0xf]  ;;  %v294_v62 = vld [vmem:[%s3111_s23 + $0x30] sm:$0xf] }
  0x41   : > { %v669_v18 = vsel %vm3166_vm13, %v384_v53, %v668_v60  ;;  %v388_v38 = vrot.slane %v386_v6, 7  ;;  %v849_v20 = vsel %vm3143_vm11, %v844_v8, %v848_v50  ;;  %v394_v22 = vshrl.u32 %v291_v5, 16 }
  0x42   : > { %v854_v21 = vrot.slane %v853_v13, 4  ;;  %670 = vst [vmem:[#allocation2 + $0x38] sm:$0x1] %v669_v18  ;;  %v403_v24 = vshrl.u32 %v292_v9, 16  ;;  %v3296_v25 = vcombine.low %v897_v11, %v907_v12  ;;  %v397_v28 = vshll.u32 %v291_v5, 16 }
  0x43   : > { %1815 = vrot.lane.b32.xlu0 %v3275_v27, %s3006_s8  ;;  %1675 = vrot.lane.b32.xlu1 %v3277_v47, %s3007_s9  ;;  %v391_v26 = vor.u32 %v389_v56, %v388_v38  ;;  %v406_v30 = vshll.u32 %v292_v9, 16  ;;  %v396_v32 = vrot.slane %v394_v22, 7  ;;  %v392_v40 = vrot.slane %v388_v38, 4  ;;  %v682_v56 = vld [vmem:[#allocation2 + $0x50] sm:$0x1] }
  0x44   : > { %v859_v31 = vsel %vm3143_vm11, %v854_v21, %v858_v14  ;;  %v405_v34 = vrot.slane %v403_v24, 7  ;;  %v411_v44 = vshrl.u32 %v293_v23, 16  ;;  %v911_v46 = vrot.slane %v909_v16, 4  ;;  %v295_v12 = vld [vmem:[%s3111_s23 + $0x34] sm:$0xf] }
  0x45   : > { %v2761_v36 = vcombine.low %v849_v20, %v859_v31  ;;  %v3300_v37 = vld [vmem:[#allocation2 + $0x34] sm:$0xf]  ;;  %v672_v41 = vsel %vm3137_vm10, %v391_v26, %v671_v19  ;;  %v914_v48 = vrot.slane %v912_v17, 5  ;;  %v399_v57 = vor.u32 %v397_v28, %v396_v32 }
  0x46   : > { %v922_v45 = vshrl.u32 %v3300_v37, 16  ;;  %v918_v49 = vshll.u32 %v3300_v37, 16  ;;  %673 = vst [vmem:[#allocation2 + $0x3c] sm:$0xf] %v672_v41  ;;  %v401_v51 = vrot.slane %v396_v32, 4  ;;  %v408_v55 = vor.u32 %v406_v30, %v405_v34 }
  0x47   : > { %1780 = vrot.lane.b32.xlu1 %v3296_v25, %s3008_s10  ;;  %1525 = vrot.lane.b32.xlu0 %v2761_v36, %s3002_s25  ;;  %v414_v58 = vshll.u32 %v293_v23, 16  ;;  %v409_v61 = vrot.slane %v405_v34, 4  ;;  %v400_v2 = vsel %vm3151_vm12, %v392_v40, %v399_v57  ;;  %v413_v6 = vrot.slane %v411_v44, 7  ;;  %v685_v21 = vld [vmem:[#allocation2 + $0x54] sm:$0xf] }
  0x48   : > { %v3309_v59 = vrot.slane %v918_v49, 5  ;;  %v924_v60 = vrot.slane %v922_v45, 4  ;;  %v676_v5 = vsel %vm3166_vm13, %v401_v51, %v675_v42  ;;  %v679_v7 = vsel %vm3137_vm10, %v408_v55, %v678_v52  ;;  %674 = vst.msk [vmem:[#allocation2 + $0x40] sm:$0xf] %vm226_vm0, %v400_v2 }
  0x49   : > { %v3312_v0 = vld [vmem:[#allocation2 + $0x38] sm:$0x1]  ;;  %v915_v8 = vor.u32 %v914_v48, %v911_v46  ;;  %677 = vst [vmem:[#allocation2 + $0x44] sm:$0x1] %v676_v5  ;;  %680 = vst [vmem:[#allocation2 + $0x48] sm:$0xf] %v679_v7  ;;  %v416_v9 = vor.u32 %v414_v58, %v413_v6  ;;  %v3343_v31 = vcombine.low %v3269_v10, %v3300_v37 }
  0x4a   : > { %v925_v50 = vor.u32 %v924_v60, %v3309_v59  ;;  %v928_v53 = vshll.u32 %v3312_v0, 16  ;;  %v418_v11 = vrot.slane %v413_v6, 4  ;;  %v420_v13 = vshrl.u32 %v294_v62, 16  ;;  %v296_v60 = vld [vmem:[%s3111_s23 + $0x38] sm:$0xf] }
  0x4b   : > { %1527 = vrot.lane.b32.xlu1 %v3277_v47, %s3002_s25  ;;  %1673 = vrot.lane.b32.xlu0 %v2761_v36, %s3007_s9  ;;  %v423_v14 = vshll.u32 %v294_v62, 16  ;;  %v417_v17 = vsel %vm3151_vm12, %v409_v61, %v416_v9  ;;  %v916_v19 = vrot.slane %v915_v8, 4  ;;  %v428_v20 = vshrl.u32 %v295_v12, 16  ;;  %v689_v8 = vld [vmem:[#allocation2 + $0x5c] sm:$0x1] }
  0x4c   : > { %v683_v18 = vsel %vm3166_vm13, %v418_v11, %v682_v56  ;;  %v422_v38 = vrot.slane %v420_v13, 7  ;;  %681 = vst.msk [vmem:[#allocation2 + $0x4c] sm:$0xf] %vm226_vm0, %v417_v17  ;;  %v926_v22 = vrot.slane %v925_v50, 4  ;;  %v930_v23 = vrot.slane %v928_v53, 5 }
  0x4d   : > { %v3327_v16 = vld [vmem:[#allocation2 + $0x3c] sm:$0xf]  ;;  %684 = vst [vmem:[#allocation2 + $0x50] sm:$0x1] %v683_v18  ;;  %v1277_v24 = vrot.slane %v3300_v37, 5  ;;  %v2730_v32 = vrot.slane %v3269_v10, 9  ;;  %v2744_v36 = vcombine.low %v3118_v3, %v3120_v4  ;;  %v921_v10 = vsel %vm3143_vm11, %v916_v19, %v3309_v59 }
  0x4e   : > { %v425_v26 = vor.u32 %v423_v14, %v422_v38  ;;  %v933_v28 = vshrl.u32 %v3327_v16, 16  ;;  %v936_v30 = vshll.u32 %v3327_v16, 16  ;;  %v430_v42 = vrot.slane %v428_v20, 7  ;;  %v297_v11 = vld [vmem:[%s3111_s23 + $0x3c] sm:$0xf] }
  0x4f   : > { %1529 = vrot.lane.b32.xlu1 %v3296_v25, %s3002_s25  ;;  %1778 = vrot.lane.b32.xlu0 %v3277_v47, %s3008_s10  ;;  %v3346_v34 = vld [vmem:[#allocation2 + $0x40] sm:$0xf]  ;;  %v431_v44 = vshll.u32 %v295_v12, 16  ;;  %v931_v37 = vsel %vm3143_vm11, %v926_v22, %v930_v23  ;;  %v1279_v45 = vrot.slane %v1277_v24, 4  ;;  %v1280_v46 = vrot.slane %v3312_v0, 5 }
  0x50   : > { %v686_v47 = vsel %vm3137_vm10, %v425_v26, %v685_v21  ;;  %v946_v40 = vshrl.u32 %v3346_v34, 16  ;;  %v942_v41 = vshll.u32 %v3346_v34, 16  ;;  %v935_v48 = vrot.slane %v933_v28, 4  ;;  %v3364_v51 = vld [vmem:[#allocation2 + $0x44] sm:$0x1] }
  0x51   : > { %687 = vst [vmem:[#allocation2 + $0x54] sm:$0xf] %v686_v47  ;;  %v938_v49 = vrot.slane %v936_v30, 5  ;;  %v426_v55 = vrot.slane %v422_v38, 4  ;;  %v433_v58 = vor.u32 %v431_v44, %v430_v42  ;;  %v1278_v59 = vsel %vm3113_vm7, %v2730_v32, %v1277_v24  ;;  %v3389_v14 = vld [vmem:[#allocation2 + $0x48] sm:$0xf] }
  0x52   : > { %v944_v52 = vrot.slane %v942_v41, 5  ;;  %v948_v57 = vrot.slane %v946_v40, 4  ;;  %v1281_v61 = vsel %vm3113_vm7, %v1279_v45, %v1280_v46  ;;  %v952_v2 = vshll.u32 %v3364_v51, 16  ;;  %v299_v26 = vld [vmem:[%s3111_s23 + $0x44] sm:$0xf] }
  0x53   : > { %1609 = vrot.lane.b32.xlu1 %v3275_v27, %s3001_s24  ;;  %1607 = vrot.lane.b32.xlu0 %v3243_v29, %s3001_s24  ;;  %v3371_v29 = vcombine.low %v921_v10, %v931_v37  ;;  %v939_v62 = vor.u32 %v938_v49, %v935_v48  ;;  %v437_v5 = vshrl.u32 %v296_v60, 16  ;;  %v434_v6 = vsel %vm3151_vm12, %v426_v55, %v433_v58  ;;  %v3408_v23 = vld [vmem:[#allocation2 + $0x4c] sm:$0xf]  ;;  %v692_v32 = vld [vmem:[#allocation2 + $0x60] sm:$0xf] }
  0x54   : > { %v949_v0 = vor.u32 %v948_v57, %v944_v52  ;;  %v3384_v7 = vcombine.low %v1278_v59, %v1281_v61  ;;  %688 = vst.msk [vmem:[#allocation2 + $0x58] sm:$0xf] %vm226_vm0, %v434_v6  ;;  %v954_v56 = vrot.slane %v952_v2, 5  ;;  %v435_v9 = vrot.slane %v430_v42, 4  ;;  %v696_v45 = vld [vmem:[#allocation2 + $0x68] sm:$0x1] }
  0x55   : > { %v940_v50 = vrot.slane %v939_v62, 4  ;;  %v439_v12 = vrot.slane %v437_v5, 7  ;;  %v1284_v13 = vrot.slane %v3346_v34, 5  ;;  %v3400_v18 = vcombine.low %v3327_v16, %v3346_v34  ;;  %v699_v58 = vld [vmem:[#allocation2 + $0x6c] sm:$0xf] }
  0x56   : > { %v950_v53 = vrot.slane %v949_v0, 4  ;;  %v690_v17 = vsel %vm3166_vm13, %v435_v9, %v689_v8  ;;  %v2731_v38 = vrot.slane %v3327_v16, 9  ;;  %v1287_v19 = vrot.slane %v3364_v51, 5  ;;  %v300_v0 = vld [vmem:[%s3111_s23 + $0x48] sm:$0xf] }
  0x57   : > { %1644 = vrot.lane.b32.xlu1 %v3343_v31, %s3003_s26  ;;  %1642 = vrot.lane.b32.xlu0 %v3231_v15, %s3003_s26  ;;  %691 = vst [vmem:[#allocation2 + $0x5c] sm:$0x1] %v690_v17  ;;  %v440_v20 = vshll.u32 %v296_v60, 16  ;;  %v945_v21 = vsel %vm3143_vm11, %v940_v50, %v944_v52  ;;  %v445_v24 = vshrl.u32 %v297_v11, 16  ;;  %v957_v28 = vshrl.u32 %v3389_v14, 16 }
  0x58   : > { %v955_v22 = vsel %vm3143_vm11, %v950_v53, %v954_v56  ;;  %v960_v30 = vshll.u32 %v3389_v14, 16  ;;  %v1286_v47 = vrot.slane %v1284_v13, 4  ;;  %v443_v40 = vrot.slane %v439_v12, 4  ;;  %v3434_v5 = vld [vmem:[#allocation2 + $0x50] sm:$0x1] }
  0x59   : > { %v442_v16 = vor.u32 %v440_v20, %v439_v12  ;;  %v447_v41 = vrot.slane %v445_v24, 7  ;;  %v3417_v44 = vcombine.low %v945_v21, %v955_v22  ;;  %v970_v10 = vshrl.u32 %v3408_v23, 16  ;;  %v301_v12 = vld [vmem:[%s3111_s23 + $0x4c] sm:$0xf]  ;;  %v3452_v24 = vld [vmem:[#allocation2 + $0x54] sm:$0xf] }
  0x5a   : > { %v966_v37 = vshll.u32 %v3408_v23, 16  ;;  %v462_v46 = vshrl.u32 %v299_v26, 16  ;;  %v959_v51 = vrot.slane %v957_v28, 4  ;;  %v962_v55 = vrot.slane %v960_v30, 5 }
  0x5b   : > { %1679 = vrot.lane.b32.xlu1 %v3371_v29, %s3007_s9  ;;  %1677 = vrot.lane.b32.xlu0 %v3296_v25, %s3007_s9  ;;  %v298_v25 = vld [vmem:[%s3111_s23 + $0x40] sm:$0xf]  ;;  %v693_v49 = vsel %vm3137_vm10, %v442_v16, %v692_v32  ;;  %v452_v52 = vrot.slane %v447_v41, 4  ;;  %v465_v62 = vshll.u32 %v299_v26, 16  ;;  %v1285_v2 = vsel %vm3113_vm7, %v2731_v38, %v1284_v13 }
  0x5c   : > { %v454_v34 = vshrl.u32 %v298_v25, 16  ;;  %v457_v42 = vshll.u32 %v298_v25, 16  ;;  %694 = vst [vmem:[#allocation2 + $0x60] sm:$0xf] %v693_v49  ;;  %v3436_v6 = vrot.slane %v966_v37, 5  ;;  %v972_v8 = vrot.slane %v970_v10, 4 }
  0x5d   : > { %v697_v59 = vsel %vm3166_vm13, %v452_v52, %v696_v45  ;;  %v1288_v50 = vsel %vm3113_vm7, %v1286_v47, %v1287_v19  ;;  %v464_v56 = vrot.slane %v462_v46, 7  ;;  %v471_v13 = vshrl.u32 %v300_v0, 16  ;;  %v706_v49 = vld [vmem:[#allocation2 + $0x78] sm:$0xf] }
  0x5e   : > { %v456_v57 = vrot.slane %v454_v34, 7  ;;  %698 = vst [vmem:[#allocation2 + $0x68] sm:$0x1] %v697_v59  ;;  %v963_v17 = vor.u32 %v962_v55, %v959_v51  ;;  %v976_v25 = vshll.u32 %v3434_v5, 16  ;;  %v3449_v19 = vcombine.low %v1285_v2, %v1288_v50  ;;  %v3487_v2 = vld [vmem:[#allocation2 + $0x5c] sm:$0x1] }
  0x5f   : > { %1714 = vrot.lane.b32.xlu1 %v3384_v7, %s3005_s30  ;;  %1712 = vrot.lane.b32.xlu0 %v3275_v27, %s3005_s30  ;;  %v448_v27 = vshll.u32 %v297_v11, 16  ;;  %v703_v11 = vld [vmem:[#allocation2 + $0x74] sm:$0x1]  ;;  %v467_v38 = vor.u32 %v465_v62, %v464_v56  ;;  %v469_v20 = vrot.slane %v464_v56, 4  ;;  %v973_v21 = vor.u32 %v972_v8, %v3436_v6 }
  0x60   : > { %v459_v61 = vor.u32 %v457_v42, %v456_v57  ;;  %v460_v53 = vrot.slane %v456_v57, 4  ;;  %v474_v22 = vshll.u32 %v300_v0, 16  ;;  %v473_v30 = vrot.slane %v471_v13, 7  ;;  %v302_v13 = vld [vmem:[%s3111_s23 + $0x50] sm:$0xf] }
  0x61   : > { %v450_v48 = vor.u32 %v448_v27, %v447_v41  ;;  %v3454_v27 = vld [vmem:[#allocation2 + $0x58] sm:$0xf]  ;;  %v704_v28 = vsel %vm3166_vm13, %v469_v20, %v703_v11  ;;  %v964_v16 = vrot.slane %v963_v17, 4  ;;  %v978_v32 = vrot.slane %v976_v25, 5  ;;  %v303_v20 = vld [vmem:[%s3111_s23 + $0x54] sm:$0xf] }
  0x62   : > { %v700_v9 = vsel %vm3137_vm10, %v459_v61, %v699_v58  ;;  %v468_v26 = vsel %vm3151_vm12, %v460_v53, %v467_v38  ;;  %705 = vst [vmem:[#allocation2 + $0x74] sm:$0x1] %v704_v28  ;;  %v1291_v34 = vrot.slane %v3408_v23, 5  ;;  %v974_v47 = vrot.slane %v973_v21, 4 }
  0x63   : > { %1749 = vrot.lane.b32.xlu1 %v3400_v18, %s3004_s27  ;;  %1747 = vrot.lane.b32.xlu0 %v3343_v31, %s3004_s27  ;;  %v451_v60 = vsel %vm3151_vm12, %v443_v40, %v450_v48  ;;  %701 = vst [vmem:[#allocation2 + $0x6c] sm:$0xf] %v700_v9  ;;  %702 = vst.msk [vmem:[#allocation2 + $0x70] sm:$0xf] %vm226_vm0, %v468_v26  ;;  %v981_v40 = vshrl.u32 %v3452_v24, 16  ;;  %v984_v41 = vshll.u32 %v3452_v24, 16 }
  0x64   : > { %695 = vst.msk [vmem:[#allocation2 + $0x64] sm:$0xf] %vm226_vm0, %v451_v60  ;;  %v994_v42 = vshrl.u32 %v3454_v27, 16  ;;  %v990_v10 = vshll.u32 %v3454_v27, 16  ;;  %v476_v37 = vor.u32 %v474_v22, %v473_v30  ;;  %v482_v46 = vshll.u32 %v301_v12, 16 }
  0x65   : > { %v3472_v48 = vcombine.low %v3389_v14, %v3408_v23  ;;  %v969_v52 = vsel %vm3143_vm11, %v964_v16, %v3436_v6  ;;  %v2732_v57 = vrot.slane %v3389_v14, 9  ;;  %v1293_v51 = vrot.slane %v1291_v34, 4  ;;  %v710_v9 = vld [vmem:[#allocation2 + $0x80] sm:$0x1] }
  0x66   : > { %v1294_v55 = vrot.slane %v3434_v5, 5  ;;  %v979_v23 = vsel %vm3143_vm11, %v974_v47, %v978_v32  ;;  %v983_v58 = vrot.slane %v981_v40, 4  ;;  %v986_v60 = vrot.slane %v984_v41, 5  ;;  %v2982_v11 = vld [vmem:[%s4405_s1 + $0x10] ss:$0 sps:$4 sm:$0x33]  }
  0x67   : > { %1784 = vrot.lane.b32.xlu1 %v3417_v44, %s3008_s10  ;;  %1782 = vrot.lane.b32.xlu0 %v3371_v29, %s3008_s10  ;;  %v477_v59 = vrot.slane %v473_v30, 4  ;;  %v992_v61 = vrot.slane %v990_v10, 5  ;;  %v996_v62 = vrot.slane %v994_v42, 4  ;;  %v707_v14 = vsel %vm3137_vm10, %v476_v37, %v706_v49  ;;  %v713_v10 = vld [vmem:[#allocation2 + $0x84] sm:$0xf] }
  0x68   : > { %708 = vst [vmem:[#allocation2 + $0x78] sm:$0xf] %v707_v14  ;;  %v987_v5 = vor.u32 %v986_v60, %v983_v58  ;;  %v1292_v8 = vsel %vm3113_vm7, %v2732_v57, %v1291_v34  ;;  %v1295_v50 = vsel %vm3113_vm7, %v1293_v51, %v1294_v55  ;;  %v1000_v56 = vshll.u32 %v3487_v2, 16  ;;  %v3525_v34 = vld [vmem:[#allocation2 + $0x60] sm:$0xf] }
  0x69   : > { %v997_v53 = vor.u32 %v996_v62, %v992_v61  ;;  %vm2185_vm14 = vcmask 1041408   ;;  %v3511_v17 = vcombine.low %v1292_v8, %v1295_v50  ;;  %v488_v28 = vshrl.u32 %v302_v13, 16  ;;  %v304_v51 = vld [vmem:[%s3111_s23 + $0x58] sm:$0xf]  ;;  %v717_v60 = vld [vmem:[#allocation2 + $0x8c] sm:$0x1] }
  0x6a   : > { %v988_v25 = vrot.slane %v987_v5, 4  ;;  %v1002_v22 = vrot.slane %v1000_v56, 5  ;;  %2952 = vmatprep.subr.msk.bf16.mxu0 %vm2185_vm14, %v2982_v11  ;;  %v2187_v26 = vsel %vm2185_vm14, %v2982_v11, 0  ;;  %v491_v30 = vshll.u32 %v302_v13, 16  ;;  %v305_v62 = vld [vmem:[%s3111_s23 + $0x5c] sm:$0xf] }
  0x6b   : > { %1531 = vrot.lane.b32.xlu1 %v3371_v29, %s3002_s25  ;;  %1817 = vrot.lane.b32.xlu0 %v3384_v7, %s3006_s8  ;;  %v479_v29 = vshrl.u32 %v301_v12, 16  ;;  %v998_v21 = vrot.slane %v997_v53, 4  ;;  %v490_v16 = vrot.slane %v488_v28, 7  ;;  %v496_v32 = vshrl.u32 %v303_v20, 16  ;;  %v3531_v42 = vld [vmem:[#allocation2 + $0x64] sm:$0xf] }
  0x6c   : > { %2883 = vmatpush3.bf16.msra.mxu0 %v2187_v26  ;;  %v499_v47 = vshll.u32 %v303_v20, 16  ;;  %v993_v40 = vsel %vm3143_vm11, %v988_v25, %v992_v61  ;;  %v2733_v37 = vrot.slane %v3452_v24, 9  ;;  %v1301_v49 = vrot.slane %v3487_v2, 5  ;;  %v307_v8 = vld [vmem:[%s3111_s23 + $0x64] sm:$0xf] }
  0x6d   : > { %v481_v45 = vrot.slane %v479_v29, 7  ;;  %v1298_v29 = vrot.slane %v3454_v27, 5  ;;  %v1003_v41 = vsel %vm3143_vm11, %v998_v21, %v1002_v22  ;;  %v1008_v57 = vshll.u32 %v3525_v34, 16  ;;  %v3564_v11 = vld [vmem:[#allocation2 + $0x68] sm:$0x1] }
  0x6e   : > { %v1018_v55 = vshrl.u32 %v3531_v42, 16  ;;  %v505_v2 = vshrl.u32 %v304_v51, 16  ;;  %v508_v5 = vshll.u32 %v304_v51, 16  ;;  %v513_v25 = vshrl.u32 %v305_v62, 16  ;;  %v720_v21 = vld [vmem:[#allocation2 + $0x90] sm:$0xf] }
  0x6f   : > { %1533 = vrot.lane.b32.xlu1 %v3417_v44, %s3002_s25  ;;  %1819 = vrot.lane.b32.xlu0 %v3449_v19, %s3006_s8  ;;  %v484_v0 = vor.u32 %v482_v46, %v481_v45  ;;  %v486_v12 = vrot.slane %v481_v45, 4  ;;  %v494_v45 = vrot.slane %v490_v16, 4  ;;  %v498_v46 = vrot.slane %v496_v32, 7 }
  0x70   : > { %v1010_v56 = vrot.slane %v1008_v57, 5  ;;  %v507_v13 = vrot.slane %v505_v2, 7  ;;  %v530_v28 = vshrl.u32 %v307_v8, 16  ;;  %v515_v32 = vrot.slane %v513_v25, 7  ;;  %v3580_v57 = vld [vmem:[#allocation2 + $0x70] sm:$0xf] }
  0x71   : > { %v485_v6 = vsel %vm3151_vm12, %v477_v59, %v484_v0  ;;  %v711_v38 = vsel %vm3166_vm13, %v486_v12, %v710_v9  ;;  %v1014_v59 = vshll.u32 %v3531_v42, 16  ;;  %v503_v61 = vrot.slane %v498_v46, 4 }
  0x72   : > { %709 = vst.msk [vmem:[#allocation2 + $0x7c] sm:$0xf] %vm226_vm0, %v485_v6  ;;  %712 = vst [vmem:[#allocation2 + $0x80] sm:$0x1] %v711_v38  ;;  %v1299_v0 = vsel %vm3113_vm7, %v2733_v37, %v1298_v29  ;;  %v306_v6 = vld [vmem:[%s3111_s23 + $0x60] sm:$0xf] }
  0x73   : > { %1613 = vrot.lane.b32.xlu1 %v3449_v19, %s3001_s24  ;;  %1611 = vrot.lane.b32.xlu0 %v3384_v7, %s3001_s24  ;;  %v3493_v7 = vcombine.low %v969_v52, %v979_v23  ;;  %v1005_v52 = vshrl.u32 %v3525_v34, 16  ;;  %v501_v23 = vor.u32 %v499_v47, %v498_v46  ;;  %v718_v9 = vsel %vm3166_vm13, %v503_v61, %v717_v60  ;;  %v727_v60 = vld [vmem:[#allocation2 + $0x9c] sm:$0xf] }
  0x74   : > { %v1020_v12 = vrot.slane %v1018_v55, 4  ;;  %719 = vst [vmem:[#allocation2 + $0x8c] sm:$0x1] %v718_v9  ;;  %v516_v38 = vshll.u32 %v305_v62, 16  ;;  %v3566_v20 = vrot.slane %v1014_v59, 5  ;;  %v522_v22 = vshrl.u32 %v306_v6, 16 }
  0x75   : > { %v502_v14 = vsel %vm3151_vm12, %v494_v45, %v501_v23  ;;  %v1007_v53 = vrot.slane %v1005_v52, 4  ;;  %v525_v26 = vshll.u32 %v306_v6, 16  ;;  %v1024_v47 = vshll.u32 %v3564_v11, 16  ;;  %v3575_v45 = vld [vmem:[#allocation2 + $0x6c] sm:$0xf] }
  0x76   : > { %716 = vst.msk [vmem:[#allocation2 + $0x88] sm:$0xf] %vm226_vm0, %v502_v14  ;;  %v533_v37 = vshll.u32 %v307_v8, 16  ;;  %v518_v46 = vor.u32 %v516_v38, %v515_v32  ;;  %v1021_v52 = vor.u32 %v1020_v12, %v3566_v20  ;;  %v1305_v59 = vrot.slane %v3531_v42, 5  ;;  %v731_v12 = vld [vmem:[#allocation2 + $0xa4] sm:$0x1] }
  0x77   : > { %1648 = vrot.lane.b32.xlu1 %v3472_v48, %s3003_s26  ;;  %1646 = vrot.lane.b32.xlu0 %v3400_v18, %s3003_s26  ;;  %v1029_v61 = vshrl.u32 %v3575_v45, 16  ;;  %v1032_v14 = vshll.u32 %v3575_v45, 16  ;;  %v1042_v2 = vshrl.u32 %v3580_v57, 16  ;;  %v1038_v6 = vshll.u32 %v3580_v57, 16 }
  0x78   : > { %v1307_v25 = vrot.slane %v1305_v59, 4  ;;  %v1308_v38 = vrot.slane %v3564_v11, 5  ;;  %vm1845_vm15 = vcmask 31744   ;;  %vm1927_vm1 = vcmask 97280  }
  0x79   : > { %vm1960_vm2 = vcmask 130048   ;;  %vm1993_vm3 = vcmask 162816   ;;  %vm2026_vm4 = vcmask 195584   ;;  %vm2059_vm5 = vcmask 228352  }
  0x7a   : > { %vm2092_vm6 = vcmask 261120   ;;  %vm2152_vm8 = vcmask 293888  }
  0x7b   : > { %1683 = vrot.lane.b32.xlu1 %v3493_v7, %s3007_s9  ;;  %1681 = vrot.lane.b32.xlu0 %v3417_v44, %s3007_s9  ;;  %v3523_v44 = vcombine.low %v3452_v24, %v3454_v27  ;;  %v1300_v27 = vrot.slane %v1298_v29, 4  ;;  %v3542_v24 = vcombine.low %v993_v40, %v1003_v41  ;;  %v510_v29 = vor.u32 %v508_v5, %v507_v13  ;;  %v724_v40 = vld [vmem:[#allocation2 + $0x98] sm:$0x1] }
  0x7c   : > { %v524_v41 = vrot.slane %v522_v22, 7  ;;  %v1022_v5 = vrot.slane %v1021_v52, 4  ;;  %v1034_v22 = vrot.slane %v1032_v14, 5 }
  0x7d   : > { %v1302_v50 = vsel %vm3113_vm7, %v1300_v27, %v1301_v49  ;;  %v721_v27 = vsel %vm3137_vm10, %v510_v29, %v720_v21  ;;  %v520_v49 = vrot.slane %v515_v32, 4  ;;  %v1031_v21 = vrot.slane %v1029_v61, 4  ;;  %v784_v29 = vld [vmem:[#allocation2 + $0x74] sm:$0x1]  ;;  %v3647_v61 = vld [vmem:[#allocation2 + $0x7c] sm:$0xf] }
  0x7e   : > { %722 = vst [vmem:[#allocation2 + $0x90] sm:$0xf] %v721_v27  ;;  %v527_v51 = vor.u32 %v525_v26, %v524_v41  ;;  %v528_v23 = vrot.slane %v524_v41, 4  ;;  %v1040_v26 = vrot.slane %v1038_v6, 5  ;;  %v1309_v32 = vsel %vm3113_vm7, %v1307_v25, %v1308_v38 }
  0x7f   : > { %1718 = vrot.lane.b32.xlu1 %v3511_v17, %s3005_s30  ;;  %1716 = vrot.lane.b32.xlu0 %v3449_v19, %s3005_s30  ;;  %v493_v19 = vor.u32 %v491_v30, %v490_v16  ;;  %v3568_v30 = vcombine.low %v1299_v0, %v1302_v50  ;;  %v511_v16 = vrot.slane %v507_v13, 4  ;;  %v725_v55 = vsel %vm3166_vm13, %v520_v49, %v724_v40  ;;  %v308_v13 = vld [vmem:[%s3111_s23 + $0x68] sm:$0xf]  ;;  %v310_v49 = vld [vmem:[%s3111_s23 + $0x70] sm:$0xf] }
  0x80   : > { %726 = vst [vmem:[#allocation2 + $0x98] sm:$0x1] %v725_v55  ;;  %v1026_v0 = vrot.slane %v1024_v47, 5  ;;  %v728_v50 = vsel %vm3137_vm10, %v527_v51, %v727_v60  ;;  %v1035_v47 = vor.u32 %v1034_v22, %v1031_v21  ;;  %v1048_v41 = vshll.u32 %v784_v29, 16 }
  0x81   : > { %v714_v58 = vsel %vm3137_vm10, %v493_v19, %v713_v10  ;;  %v532_v10 = vrot.slane %v530_v28, 7  ;;  %v1011_v19 = vor.u32 %v1010_v56, %v1007_v53  ;;  %729 = vst [vmem:[#allocation2 + $0x9c] sm:$0xf] %v728_v50  ;;  %v3603_v53 = vcombine.low %v3525_v34, %v3531_v42 }
  0x82   : > { %715 = vst [vmem:[#allocation2 + $0x84] sm:$0xf] %v714_v58  ;;  %v2734_v56 = vrot.slane %v3525_v34, 9  ;;  %v1027_v34 = vsel %vm3143_vm11, %v1022_v5, %v1026_v0  ;;  %v1044_v28 = vrot.slane %v1042_v2, 4  ;;  %v1312_v27 = vrot.slane %v3580_v57, 5 }
  0x83   : > { %1753 = vrot.lane.b32.xlu1 %v3523_v44, %s3004_s27  ;;  %1751 = vrot.lane.b32.xlu0 %v3472_v48, %s3004_s27  ;;  %v535_v58 = vor.u32 %v533_v37, %v532_v10  ;;  %v1012_v62 = vrot.slane %v1011_v19, 4  ;;  %v537_v9 = vrot.slane %v532_v10, 4  ;;  %v542_v37 = vshll.u32 %v308_v13, 16  ;;  %v309_v19 = vld [vmem:[%s3111_s23 + $0x6c] sm:$0xf] }
  0x84   : > { %v1045_v40 = vor.u32 %v1044_v28, %v1040_v26  ;;  %v1036_v52 = vrot.slane %v1035_v47, 4  ;;  %v2735_v55 = vrot.slane %v3575_v45, 9  ;;  %v556_v0 = vshrl.u32 %v310_v49, 16 }
  0x85   : > { %v536_v8 = vsel %vm3151_vm12, %v528_v23, %v535_v58  ;;  %v1017_v42 = vsel %vm3143_vm11, %v1012_v62, %v3566_v20  ;;  %v1306_v20 = vsel %vm3113_vm7, %v2734_v56, %v1305_v59  ;;  %v3639_v23 = vld [vmem:[#allocation2 + $0x78] sm:$0xf]  ;;  %v547_v59 = vshrl.u32 %v309_v19, 16  ;;  %v734_v62 = vld [vmem:[#allocation2 + $0xa8] sm:$0xf] }
  0x86   : > { %730 = vst.msk [vmem:[#allocation2 + $0xa0] sm:$0xf] %vm226_vm0, %v536_v8  ;;  %v3623_v11 = vcombine.low %v1017_v42, %v1027_v34  ;;  %v1046_v51 = vrot.slane %v1045_v40, 4  ;;  %v1314_v2 = vrot.slane %v1312_v27, 4  ;;  %v1315_v5 = vrot.slane %v784_v29, 5 }
  0x87   : > { %1788 = vrot.lane.b32.xlu1 %v3542_v24, %s3008_s10  ;;  %1786 = vrot.lane.b32.xlu0 %v3493_v7, %s3008_s10  ;;  %v1053_v6 = vshrl.u32 %v3639_v23, 16  ;;  %v550_v8 = vshll.u32 %v309_v19, 16  ;;  %v1313_v56 = vsel %vm3113_vm7, %v2735_v55, %v1312_v27  ;;  %v1062_v38 = vshll.u32 %v3647_v61, 16  ;;  %v312_v34 = vld [vmem:[%s3111_s23 + $0x78] sm:$0xf] }
  0x88   : > { %v558_v21 = vrot.slane %v556_v0, 7  ;;  %v559_v22 = vshll.u32 %v310_v49, 16  ;;  %v1316_v29 = vsel %vm3113_vm7, %v1314_v2, %v1315_v5 }
  0x8a   : > { %v562_v27 = vrot.slane %v558_v21, 4 }
  0x8b   : > { %1535 = vrot.lane.b32.xlu1 %v3493_v7, %s3002_s25  ;;  %1821 = vrot.lane.b32.xlu0 %v3511_v17, %s3006_s8  ;;  %v519_v7 = vsel %vm3151_vm12, %v511_v16, %v518_v46  ;;  %v732_v16 = vsel %vm3166_vm13, %v537_v9, %v731_v12  ;;  %v3634_v46 = vcombine.low %v1306_v20, %v1309_v32  ;;  %v1066_v9 = vshrl.u32 %v3647_v61, 16  ;;  %v738_v20 = vld [vmem:[#allocation2 + $0xb0] sm:$0x1]  ;;  %v741_v32 = vld [vmem:[#allocation2 + $0xb4] sm:$0xf] }
  0x8c   : > { %723 = vst.msk [vmem:[#allocation2 + $0x94] sm:$0xf] %vm226_vm0, %v519_v7  ;;  %733 = vst [vmem:[#allocation2 + $0xa4] sm:$0x1] %v732_v16  ;;  %v1050_v7 = vrot.slane %v1048_v41, 5  ;;  %v1055_v16 = vrot.slane %v1053_v6, 4  ;;  %v561_v41 = vor.u32 %v559_v22, %v558_v21 }
  0x8d   : > { %v1068_v55 = vrot.slane %v1066_v9, 4  ;;  %v576_v6 = vshll.u32 %v312_v34, 16 }
  0x8e   : > { %v1051_v50 = vsel %vm3143_vm11, %v1046_v51, %v1050_v7  ;;  %v573_v51 = vshrl.u32 %v312_v34, 16  ;;  %v3684_v7 = vrot.slane %v1062_v38, 5  ;;  %v3705_v38 = vcombine.low %v1313_v56, %v1316_v29  ;;  %v3716_v56 = vld [vmem:[#allocation2 + $0x84] sm:$0xf] }
  0x8f   : > { %1537 = vrot.lane.b32.xlu1 %v3542_v24, %s3002_s25  ;;  %1823 = vrot.lane.b32.xlu0 %v3568_v30, %s3006_s8 }
  0x90   : > { %v575_v5 = vrot.slane %v573_v51, 7 }
  0x93   : > { %1617 = vrot.lane.b32.xlu1 %v3568_v30, %s3001_s24  ;;  %1615 = vrot.lane.b32.xlu0 %v3511_v17, %s3001_s24  ;;  %v539_v17 = vshrl.u32 %v308_v13, 16  ;;  %v549_v13 = vrot.slane %v547_v59, 7  ;;  %v742_v59 = vsel %vm3137_vm10, %v561_v41, %v741_v32  ;;  %v3720_v32 = vld [vmem:[#allocation2 + $0x88] sm:$0xf]  ;;  %v1319_v41 = vrot.slane %v3647_v61, 5 }
  0x94   : > { %743 = vst [vmem:[#allocation2 + $0xb4] sm:$0xf] %v742_v59  ;;  %v2736_v59 = vrot.slane %v3639_v23, 9 }
  0x95   : > { %v541_v10 = vrot.slane %v539_v17, 7  ;;  %v552_v17 = vor.u32 %v550_v8, %v549_v13  ;;  %v554_v40 = vrot.slane %v549_v13, 4  ;;  %v3695_v8 = vld [vmem:[#allocation2 + $0x80] sm:$0x1]  ;;  %v578_v13 = vor.u32 %v576_v6, %v575_v5 }
  0x96   : > { %v1072_v34 = vshll.u32 %v3695_v8, 16 }
  0x97   : > { %1652 = vrot.lane.b32.xlu1 %v3603_v53, %s3003_s26  ;;  %1650 = vrot.lane.b32.xlu0 %v3523_v44, %s3003_s26  ;;  %v3641_v58 = vpop.permute.xlu1 %1603  ;;  %v544_v60 = vor.u32 %v542_v37, %v541_v10  ;;  %v545_v12 = vrot.slane %v541_v10, 4 }
  0x99   : > { %v3653_v14 = vpop.permute.xlu0 %1523  ;;  %v735_v25 = vsel %vm3137_vm10, %v544_v60, %v734_v62  ;;  %v553_v19 = vsel %vm3151_vm12, %v545_v12, %v552_v17  ;;  %v739_v60 = vsel %vm3166_vm13, %v554_v40, %v738_v20  ;;  %v745_v62 = vld [vmem:[#allocation2 + $0xbc] sm:$0x1] }
  0x9a   : > { %736 = vst [vmem:[#allocation2 + $0xa8] sm:$0xf] %v735_v25  ;;  %737 = vst.msk [vmem:[#allocation2 + $0xac] sm:$0xf] %vm226_vm0, %v553_v19  ;;  %v1080_v19 = vshll.u32 %v3716_v56, 16 }
  0x9b   : > { %1687 = vrot.lane.b32.xlu1 %v3623_v11, %s3007_s9  ;;  %1685 = vrot.lane.b32.xlu0 %v3542_v24, %s3007_s9  ;;  %v3645_v24 = vcombine.low %v3575_v45, %v3580_v57  ;;  %v311_v45 = vld [vmem:[%s3111_s23 + $0x74] sm:$0xf]  ;;  %v1041_v57 = vsel %vm3143_vm11, %v1036_v52, %v1040_v26  ;;  %v313_v52 = vld [vmem:[%s3111_s23 + $0x7c] sm:$0xf]  ;;  %740 = vst [vmem:[#allocation2 + $0xb0] sm:$0x1] %v739_v60 }
  0x9c   : > { %v564_v42 = vshrl.u32 %v311_v45, 16  ;;  %v3675_v28 = vcombine.low %v1041_v57, %v1051_v50  ;;  %v567_v49 = vshll.u32 %v311_v45, 16  ;;  %v581_v45 = vshrl.u32 %v313_v52, 16  ;;  %v748_v57 = vld [vmem:[#allocation2 + $0xc0] sm:$0xf] }
  0x9d   : > { %v584_v25 = vshll.u32 %v313_v52, 16  ;;  %v749_v17 = vsel %vm3137_vm10, %v578_v13, %v748_v57  ;;  %v3737_v60 = vcombine.low %v3639_v23, %v3647_v61  ;;  %v1322_v61 = vrot.slane %v3695_v8, 5 }
  0x9e   : > { %v566_v10 = vrot.slane %v564_v42, 7  ;;  %v583_v21 = vrot.slane %v581_v45, 7  ;;  %v1069_v42 = vor.u32 %v1068_v55, %v3684_v7  ;;  %750 = vst [vmem:[#allocation2 + $0xc0] sm:$0xf] %v749_v17  ;;  %v1320_v8 = vsel %vm3113_vm7, %v2736_v59, %v1319_v41  ;;  %v3821_v59 = vld [vmem:[#allocation2 + $0x94] sm:$0xf] }
  0x9f   : > { %1722 = vrot.lane.b32.xlu1 %v3634_v46, %s3005_s30  ;;  %1720 = vrot.lane.b32.xlu0 %v3568_v30, %s3005_s30  ;;  %v1056_v30 = vshll.u32 %v3639_v23, 16  ;;  %v3751_v23 = vld [vmem:[#allocation2 + $0x8c] sm:$0x1] }
  0xa0   : > { %v569_v0 = vor.u32 %v567_v49, %v566_v10  ;;  %v571_v2 = vrot.slane %v566_v10, 4  ;;  %v586_v40 = vor.u32 %v584_v25, %v583_v21  ;;  %v1077_v10 = vshrl.u32 %v3716_v56, 16 }
  0xa1   : > { %v1058_v47 = vrot.slane %v1056_v30, 5  ;;  %v1086_v49 = vshll.u32 %v3720_v32, 16  ;;  %v588_v57 = vrot.slane %v583_v21, 4  ;;  %v1096_v13 = vshll.u32 %v3751_v23, 16 }
  0xa2   : > { %v3673_v26 = vpop.permute.xlu1 %1640  ;;  %v570_v9 = vsel %vm3151_vm12, %v562_v27, %v569_v0  ;;  %v746_v12 = vsel %vm3166_vm13, %v571_v2, %v745_v62  ;;  %v1090_v27 = vshrl.u32 %v3720_v32, 16  ;;  %v1321_v62 = vrot.slane %v1319_v41, 4 }
  0xa3   : > { %1757 = vrot.lane.b32.xlu1 %v3645_v24, %s3004_s27  ;;  %1755 = vrot.lane.b32.xlu0 %v3603_v53, %s3004_s27  ;;  %744 = vst.msk [vmem:[#allocation2 + $0xb8] sm:$0xf] %vm226_vm0, %v570_v9  ;;  %747 = vst [vmem:[#allocation2 + $0xbc] sm:$0x1] %v746_v12  ;;  %v1059_v22 = vor.u32 %v1058_v47, %v1055_v16  ;;  %v1070_v16 = vrot.slane %v1069_v42, 4  ;;  %v1074_v47 = vrot.slane %v1072_v34, 5 }
  0xa4   : > { %v1079_v2 = vrot.slane %v1077_v10, 4  ;;  %v3753_v6 = vrot.slane %v1086_v49, 5  ;;  %v1092_v45 = vrot.slane %v1090_v27, 4  ;;  %v752_v12 = vld [vmem:[#allocation2 + $0xc8] sm:$0x1]  ;;  %v1323_v25 = vsel %vm3113_vm7, %v1321_v62, %v1322_v61 }
  0xa5   : > { %v3679_v37 = vpop.permute.xlu0 %1638  ;;  %v1060_v33 = vrot.slane %v1059_v22, 4  ;;  %v1075_v0 = vsel %vm3143_vm11, %v1070_v16, %v1074_v47  ;;  %v753_v42 = vsel %vm3166_vm13, %v588_v57, %v752_v12  ;;  %v1848_v34 = vsel %vm1845_vm15, %v2744_v36, %v3653_v14 }
  0xa6   : > { %v1093_v22 = vor.u32 %v1092_v45, %v3753_v6  ;;  %754 = vst [vmem:[#allocation2 + $0xc8] sm:$0x1] %v753_v42  ;;  %v3783_v3 = vcombine.low %v1320_v8, %v1323_v25  ;;  %v1098_v4 = vrot.slane %v1096_v13, 5  ;;  %v1326_v49 = vrot.slane %v3720_v32, 5  ;;  %v793_v8 = vld [vmem:[#allocation2 + $0x98] sm:$0x1] }
  0xa7   : > { %1792 = vrot.lane.b32.xlu1 %v3675_v28, %s3008_s10  ;;  %1790 = vrot.lane.b32.xlu0 %v3623_v11, %s3008_s10  ;;  %v1065_v43 = vsel %vm3143_vm11, %v1060_v33, %v3684_v7  ;;  %v2737_v62 = vrot.slane %v3716_v56, 9 }
  0xa8   : > { %v3761_v7 = vcombine.low %v1065_v43, %v1075_v0  ;;  %v1094_v14 = vrot.slane %v1093_v22, 4  ;;  %v1329_v43 = vrot.slane %v3751_v23, 5  ;;  %v1328_v23 = vrot.slane %v1326_v49, 4 }
  0xa9   : > { %v3697_v50 = vpop.permute.xlu1 %1745  ;;  %v3699_v30 = vpop.permute.xlu0 %1743 }
  0xaa   : > { %v1099_v27 = vsel %vm3143_vm11, %v1094_v14, %v1098_v4  ;;  %v1330_v12 = vsel %vm3113_vm7, %v1328_v23, %v1329_v43 }
  0xab   : > { %1539 = vrot.lane.b32.xlu1 %v3623_v11, %s3002_s25  ;;  %1825 = vrot.lane.b32.xlu0 %v3634_v46, %s3006_s8  ;;  %v579_v11 = vrot.slane %v575_v5, 4  ;;  %v1082_v5 = vrot.slane %v1080_v19, 5 }
  0xad   : > { %v3718_v29 = vpop.permute.xlu0 %1708  ;;  %v1606_v20 = vpop.permute.xlu1 %1605  ;;  %v587_v55 = vsel %vm3151_vm12, %v579_v11, %v586_v40  ;;  %v1083_v21 = vor.u32 %v1082_v5, %v1079_v2  ;;  %v1114_v5 = vshrl.u32 %v3821_v59, 16 }
  0xae   : > { %751 = vst.msk [vmem:[#allocation2 + $0xc4] sm:$0xf] %vm226_vm0, %v587_v55  ;;  %vm1894_vm0 = vcmask 64512  }
  0xaf   : > { %1541 = vrot.lane.b32.xlu1 %v3675_v28, %s3002_s25  ;;  %1827 = vrot.lane.b32.xlu0 %v3705_v38, %s3006_s8  ;;  %v1896_v63 = vsel %vm1894_vm0, %v1848_v34, %v3641_v58  ;;  %v1116_v25 = vrot.slane %v1114_v5, 4 }
  0xb1   : > { %v3731_v52 = vpop.permute.xlu0 %1813  ;;  %v1711_v51 = vpop.permute.xlu1 %1710 }
  0xb3   : > { %1621 = vrot.lane.b32.xlu1 %v3705_v38, %s3001_s24  ;;  %1619 = vrot.lane.b32.xlu0 %v3634_v46, %s3001_s24 }
  0xb5   : > { %v3755_v9 = vpop.permute.xlu0 %1815  ;;  %v1676_v46 = vpop.permute.xlu1 %1675 }
  0xb7   : > { %1656 = vrot.lane.b32.xlu1 %v3737_v60, %s3003_s26  ;;  %1654 = vrot.lane.b32.xlu0 %v3645_v24, %s3003_s26 }
  0xb9   : > { %v1781_v17 = vpop.permute.xlu1 %1780  ;;  %v1526_v11 = vpop.permute.xlu0 %1525 }
  0xba   : > { %v1851_v40 = vsel %vm1845_vm15, %v3213_v54, %v1526_v11  ;;  %v1084_v54 = vrot.slane %v1083_v21, 4 }
  0xbb   : > { %v1898_v41 = vsel %vm1894_vm0, %v1851_v40, %v1606_v20  ;;  %1691 = vrot.lane.b32.xlu1 %v3761_v7, %s3007_s9  ;;  %1689 = vrot.lane.b32.xlu0 %v3675_v28, %s3007_s9  ;;  %v1929_v20 = vsel %vm1927_vm1, %v1896_v63, %v3679_v37  ;;  %v3860_v40 = vld [vmem:[#allocation2 + $0x9c] sm:$0xf]  ;;  %v3862_v63 = vld [vmem:[#allocation2 + $0xa0] sm:$0xf] }
  0xbc   : > { %v1931_v36 = vsel %vm1927_vm1, %v1898_v41, %v3673_v26  ;;  %v3804_v26 = vcombine.low %v3716_v56, %v3720_v32  ;;  %v1125_v14 = vshrl.u32 %v3860_v40, 16 }
  0xbd   : > { %v1964_v33 = vsel %vm1960_vm2, %v1931_v36, %v1676_v46  ;;  %v3792_v16 = vpop.permute.xlu1 %1527  ;;  %v1674_v28 = vpop.permute.xlu0 %1673 }
  0xbe   : > { %v1962_v47 = vsel %vm1960_vm2, %v1929_v20, %v1674_v28  ;;  %v1997_v10 = vsel %vm1993_vm3, %v1964_v33, %v1711_v51  ;;  %v1128_v33 = vshll.u32 %v3860_v40, 16  ;;  %v1138_v28 = vshrl.u32 %v3862_v63, 16 }
  0xbf   : > { %v1995_v58 = vsel %vm1993_vm3, %v1962_v47, %v3718_v29  ;;  %1726 = vrot.lane.b32.xlu1 %v3783_v3, %s3005_s30  ;;  %1724 = vrot.lane.b32.xlu0 %v3705_v38, %s3005_s30  ;;  %v2030_v37 = vsel %vm2026_vm4, %v1997_v10, %v3697_v50  ;;  %v1089_v29 = vsel %vm3143_vm11, %v1084_v54, %v3753_v6  ;;  %v3816_v38 = vld [vmem:[#allocation2 + $0x90] sm:$0xf]  ;;  %v1110_v6 = vshll.u32 %v3821_v59, 16 }
  0xc0   : > { %v2028_v19 = vsel %vm2026_vm4, %v1995_v58, %v3699_v30  ;;  %v2063_v50 = vsel %vm2059_vm5, %v2030_v37, %v1781_v17  ;;  %v3832_v0 = vcombine.low %v1089_v29, %v1099_v27  ;;  %v1101_v61 = vshrl.u32 %v3816_v38, 16 }
  0xc1   : > { %v3818_v51 = vpop.permute.xlu1 %1529  ;;  %v1779_v55 = vpop.permute.xlu0 %1778  ;;  %v1104_v2 = vshll.u32 %v3816_v38, 16  ;;  %v2096_v56 = vsel %vm2092_vm6, %v2063_v50, %v3755_v9  ;;  %v1327_v9 = vsel %vm3113_vm7, %v2737_v62, %v1326_v49  ;;  %v1112_v13 = vrot.slane %v1110_v6, 5 }
  0xc2   : > { %v2061_v30 = vsel %vm2059_vm5, %v2028_v19, %v1779_v55  ;;  %v1103_v57 = vrot.slane %v1101_v61, 4  ;;  %v3858_v42 = vcombine.low %v1327_v9, %v1330_v12  ;;  %v1120_v17 = vshll.u32 %v793_v8, 16 }
  0xc3   : > { %1761 = vrot.lane.b32.xlu1 %v3804_v26, %s3004_s27  ;;  %1759 = vrot.lane.b32.xlu0 %v3737_v60, %s3004_s27  ;;  %v2094_v32 = vsel %vm2092_vm6, %v2061_v30, %v3731_v52  ;;  %v1106_v46 = vrot.slane %v1104_v2, 5  ;;  %v1117_v11 = vor.u32 %v1116_v25, %v1112_v13  ;;  %v1333_v54 = vrot.slane %v3821_v59, 5  ;;  %v3886_v30 = vld [vmem:[#allocation2 + $0xa4] sm:$0x1] }
  0xc4   : > { %2884 = vmatprep.mubr.msk.bf16.mxu0 %vm2152_vm8, %v2094_v32  ;;  %v1122_v36 = vrot.slane %v1120_v17, 5  ;;  %v1134_v47 = vshll.u32 %v3862_v63, 16  ;;  %v3875_v37 = vcombine.low %v3816_v38, %v3821_v59  ;;  %v2738_v19 = vrot.slane %v3816_v38, 9 }
  0xc5   : > { %v3841_v45 = vpop.permute.xlu1 %1609  ;;  %2885 = vmatmul.mubr.msk.bf16.vlgmr.msra.gmra.mrb[0].mxu0 %vm2152_vm8, %v2096_v56  ;;  %v1608_v52 = vpop.permute.xlu0 %1607  ;;  %v1107_v34 = vor.u32 %v1106_v46, %v1103_v57  ;;  %v1118_v20 = vrot.slane %v1117_v11, 4  ;;  %v1335_v27 = vrot.slane %v1333_v54, 4  ;;  %v1336_v49 = vrot.slane %v793_v8, 5 }
  0xc6   : > { %v1127_v55 = vrot.slane %v1125_v14, 4  ;;  %v1130_v59 = vrot.slane %v1128_v33, 5  ;;  %v1136_v62 = vrot.slane %v1134_v47, 5  ;;  %v1140_v38 = vrot.slane %v1138_v28, 4  ;;  %v3946_v47 = vld [vmem:[#allocation2 + $0xac] sm:$0xf] }
  0xc7   : > { %1796 = vrot.lane.b32.xlu1 %v3832_v0, %s3008_s10  ;;  %1794 = vrot.lane.b32.xlu0 %v3761_v7, %s3008_s10  ;;  %v1123_v50 = vsel %vm3143_vm11, %v1118_v20, %v1122_v36  ;;  %v1334_v2 = vsel %vm3113_vm7, %v2738_v19, %v1333_v54  ;;  %v1144_v56 = vshll.u32 %v3886_v30, 16  ;;  %v1337_v5 = vsel %vm3113_vm7, %v1335_v27, %v1336_v49  ;;  %v3941_v20 = vld [vmem:[#allocation2 + $0xa8] sm:$0xf] }
  0xc8   : > { %v1131_v6 = vor.u32 %v1130_v59, %v1127_v55  ;;  %v1857_v12 = vsel %vm1845_vm15, %v3231_v15, %v3818_v51  ;;  %v1340_v14 = vrot.slane %v3862_v63, 5  ;;  %v1149_v19 = vshrl.u32 %v3941_v20, 16 }
  0xc9   : > { %v3852_v21 = vpop.permute.xlu1 %1644  ;;  %v1643_v22 = vpop.permute.xlu0 %1642  ;;  %v1902_v25 = vsel %vm1894_vm0, %v1857_v12, %v3841_v45  ;;  %v3932_v45 = vcombine.low %v3860_v40, %v3862_v63  ;;  %v2739_v63 = vrot.slane %v3860_v40, 9  ;;  %v1343_v49 = vrot.slane %v3886_v30, 5  ;;  %v3982_v12 = vld [vmem:[#allocation2 + $0xb8] sm:$0xf] }
  0xca   : > { %v1935_v15 = vsel %vm1927_vm1, %v1902_v25, %v3852_v21  ;;  %v1342_v27 = vrot.slane %v1340_v14, 4  ;;  %v1162_v55 = vshrl.u32 %v3946_v47, 16  ;;  %v1151_v40 = vrot.slane %v1149_v19, 4 }
  0xcb   : > { %1543 = vrot.lane.b32.xlu1 %v3761_v7, %s3002_s25  ;;  %1829 = vrot.lane.b32.xlu0 %v3783_v3, %s3006_s8  ;;  %v1108_v7 = vrot.slane %v1107_v34, 4  ;;  %v1132_v34 = vrot.slane %v1131_v6, 4 }
  0xcc   : > { %v1344_v30 = vsel %vm3113_vm7, %v1342_v27, %v1343_v49 }
  0xcd   : > { %v1680_v41 = vpop.permute.xlu1 %1679  ;;  %v1678_v4 = vpop.permute.xlu0 %1677  ;;  %v1113_v29 = vsel %vm3143_vm11, %v1108_v7, %v1112_v13  ;;  %v1146_v13 = vrot.slane %v1144_v56, 5 }
  0xce   : > { %v3895_v61 = vcombine.low %v1113_v29, %v1123_v50  ;;  %v1152_v29 = vshll.u32 %v3941_v20, 16  ;;  %v1158_v50 = vshll.u32 %v3946_v47, 16 }
  0xcf   : > { %1545 = vrot.lane.b32.xlu1 %v3832_v0, %s3002_s25  ;;  %1831 = vrot.lane.b32.xlu0 %v3858_v42, %s3006_s8 }
  0xd1   : > { %v1715_v10 = vpop.permute.xlu1 %1714  ;;  %v1713_v58 = vpop.permute.xlu0 %1712 }
  0xd3   : > { %1625 = vrot.lane.b32.xlu1 %v3858_v42, %s3001_s24  ;;  %1623 = vrot.lane.b32.xlu0 %v3783_v3, %s3001_s24  ;;  %v1854_v3 = vsel %vm1845_vm15, %v3195_v39, %v3792_v16  ;;  %v1141_v39 = vor.u32 %v1140_v38, %v1136_v62  ;;  %v1154_v38 = vrot.slane %v1152_v29, 5 }
  0xd4   : > { %v1900_v23 = vsel %vm1894_vm0, %v1854_v3, %v1608_v52  ;;  %v3913_v52 = vcombine.low %v1334_v2, %v1337_v5  ;;  %v1164_v3 = vrot.slane %v1162_v55, 4 }
  0xd5   : > { %v1750_v43 = vpop.permute.xlu1 %1749  ;;  %v1748_v32 = vpop.permute.xlu0 %1747  ;;  %v1933_v16 = vsel %vm1927_vm1, %v1900_v23, %v1643_v22  ;;  %v1142_v17 = vrot.slane %v1141_v39, 4  ;;  %v799_v23 = vld [vmem:[#allocation2 + $0xb0] sm:$0x1]  ;;  %v1155_v6 = vor.u32 %v1154_v38, %v1151_v40 }
  0xd6   : > { %v1966_v9 = vsel %vm1960_vm2, %v1933_v16, %v1678_v4  ;;  %v1168_v16 = vshll.u32 %v799_v23, 16 }
  0xd7   : > { %1660 = vrot.lane.b32.xlu1 %v3875_v37, %s3003_s26  ;;  %1658 = vrot.lane.b32.xlu0 %v3804_v26, %s3003_s26  ;;  %v1999_v8 = vsel %vm1993_vm3, %v1966_v9, %v1713_v58  ;;  %v1147_v54 = vsel %vm3143_vm11, %v1142_v17, %v1146_v13  ;;  %v1186_v17 = vshrl.u32 %v3982_v12, 16 }
  0xd8   : > { %v2032_v22 = vsel %vm2026_vm4, %v1999_v8, %v1748_v32  ;;  %v1160_v32 = vrot.slane %v1158_v50, 5  ;;  %v1347_v8 = vrot.slane %v3946_v47, 5 }
  0xd9   : > { %v1785_v57 = vpop.permute.xlu1 %1784  ;;  %v1783_v46 = vpop.permute.xlu0 %1782 }
  0xda   : > { %v2065_v51 = vsel %vm2059_vm5, %v2032_v22, %v1783_v46  ;;  %v1165_v39 = vor.u32 %v1164_v3, %v1160_v32 }
  0xdb   : > { %1695 = vrot.lane.b32.xlu1 %v3895_v61, %s3007_s9  ;;  %1693 = vrot.lane.b32.xlu0 %v3832_v0, %s3007_s9  ;;  %v1968_v0 = vsel %vm1960_vm2, %v1935_v15, %v1680_v41  ;;  %v1137_v41 = vsel %vm3143_vm11, %v1132_v34, %v1136_v62  ;;  %v1170_v34 = vrot.slane %v1168_v16, 5  ;;  %v1182_v15 = vshll.u32 %v3982_v12, 16 }
  0xdc   : > { %v2001_v36 = vsel %vm1993_vm3, %v1968_v0, %v1715_v10  ;;  %v3953_v58 = vcombine.low %v1137_v41, %v1147_v54  ;;  %v1166_v22 = vrot.slane %v1165_v39, 4  ;;  %v3995_v0 = vcombine.low %v3941_v20, %v3946_v47 }
  0xdd   : > { %v3921_v11 = vpop.permute.xlu1 %1531  ;;  %v1818_v4 = vpop.permute.xlu0 %1817  ;;  %v2034_v21 = vsel %vm2026_vm4, %v2001_v36, %v1750_v43  ;;  %v1341_v43 = vsel %vm3113_vm7, %v2739_v63, %v1340_v14  ;;  %v1350_v41 = vrot.slane %v799_v23, 5  ;;  %v1184_v47 = vrot.slane %v1182_v15, 5  ;;  %v4066_v15 = vld [vmem:[#allocation2 + $0xc4] sm:$0xf] }
  0xde   : > { %v2098_v7 = vsel %vm2092_vm6, %v2065_v51, %v1818_v4  ;;  %v3978_v5 = vcombine.low %v1341_v43, %v1344_v30  ;;  %v1171_v14 = vsel %vm3143_vm11, %v1166_v22, %v1170_v34  ;;  %v4061_v22 = vld [vmem:[#allocation2 + $0xc0] sm:$0xf] }
  0xdf   : > { %1730 = vrot.lane.b32.xlu1 %v3913_v52, %s3005_s30  ;;  %1728 = vrot.lane.b32.xlu0 %v3858_v42, %s3005_s30  ;;  %v2067_v42 = vsel %vm2059_vm5, %v2034_v21, %v1785_v57  ;;  %v3980_v57 = vld [vmem:[#allocation2 + $0xb4] sm:$0xf]  ;;  %v1349_v21 = vrot.slane %v1347_v8, 4 }
  0xe0   : > { %2888 = vmatprep.mubr.msk.bf16.mxu0 %vm2152_vm8, %v2098_v7  ;;  %v1173_v13 = vshrl.u32 %v3980_v57, 16  ;;  %v1176_v25 = vshll.u32 %v3980_v57, 16  ;;  %v2740_v7 = vrot.slane %v3941_v20, 9  ;;  %v1188_v20 = vrot.slane %v1186_v17, 4 }
  0xe1   : > { %v3944_v33 = vpop.permute.xlu1 %1533  ;;  %v1820_v28 = vpop.permute.xlu0 %1819  ;;  %v1351_v55 = vsel %vm3113_vm7, %v1349_v21, %v1350_v41  ;;  %v1363_v41 = vshll.u32 %v4061_v22, 16 }
  0xe2   : > { %v2100_v10 = vsel %vm2092_vm6, %v2067_v42, %v1820_v28  ;;  %v1175_v54 = vrot.slane %v1173_v13, 4  ;;  %v4006_v42 = vld [vmem:[#allocation2 + $0xbc] sm:$0x1]  ;;  %v1178_v28 = vrot.slane %v1176_v25, 5  ;;  %v1348_v29 = vsel %vm3113_vm7, %v2740_v7, %v1347_v8 }
  0xe3   : > { %1765 = vrot.lane.b32.xlu1 %v3932_v45, %s3004_s27  ;;  %1763 = vrot.lane.b32.xlu0 %v3875_v37, %s3004_s27  ;;  %v1192_v27 = vshll.u32 %v4006_v42, 16  ;;  %v1863_v30 = vsel %vm1845_vm15, %v3400_v18, %v3944_v33  ;;  %v1354_v25 = vrot.slane %v3982_v12, 5  ;;  %v1357_v7 = vrot.slane %v4006_v42, 5 }
  0xe4   : > { %2889 = vmatmul.mubr.msk.bf16.gmra.mrb[4].mxu0 %vm2152_vm8, %v2100_v10  ;;  %v1179_v50 = vor.u32 %v1178_v28, %v1175_v54  ;;  %v1373_v54 = vshrl.u32 %v4066_v15, 16 }
  0xe5   : > { %v3962_v59 = vpop.permute.xlu1 %1613  ;;  %v1612_v62 = vpop.permute.xlu0 %1611  ;;  %v1194_v3 = vrot.slane %v1192_v27, 5  ;;  %v1356_v21 = vrot.slane %v1354_v25, 4 }
  0xe7   : > { %1800 = vrot.lane.b32.xlu1 %v3953_v58, %s3008_s10  ;;  %1798 = vrot.lane.b32.xlu0 %v3895_v61, %s3008_s10 }
  0xe9   : > { %v3972_v2 = vpop.permute.xlu1 %1648  ;;  %v1647_v56 = vpop.permute.xlu0 %1646 }
  0xeb   : > { %1547 = vrot.lane.b32.xlu1 %v3895_v61, %s3002_s25  ;;  %1833 = vrot.lane.b32.xlu0 %v3913_v52, %s3006_s8  ;;  %v1156_v61 = vrot.slane %v1155_v6, 4  ;;  %v1180_v6 = vrot.slane %v1179_v50, 4  ;;  %v4100_v50 = vld [vmem:[#allocation2 + $0xcc] sm:$0xf] }
  0xed   : > { %v1684_v46 = vpop.permute.xlu1 %1683  ;;  %v1682_v9 = vpop.permute.xlu0 %1681  ;;  %v1161_v36 = vsel %vm3143_vm11, %v1156_v61, %v1160_v32 }
  0xee   : > { %v4015_v19 = vcombine.low %v1161_v36, %v1171_v14  ;;  %v1360_v36 = vshrl.u32 %v4061_v22, 16  ;;  %v1369_v14 = vshll.u32 %v4066_v15, 16 }
  0xef   : > { %1549 = vrot.lane.b32.xlu1 %v3953_v58, %s3002_s25  ;;  %1835 = vrot.lane.b32.xlu0 %v3978_v5, %s3006_s8 }
  0xf0   : > { %v1362_v42 = vrot.slane %v1360_v36, 4 }
  0xf1   : > { %v1719_v51 = vpop.permute.xlu1 %1718  ;;  %v1717_v4 = vpop.permute.xlu0 %1716 }
  0xf3   : > { %1629 = vrot.lane.b32.xlu1 %v3978_v5, %s3001_s24  ;;  %1627 = vrot.lane.b32.xlu0 %v3913_v52, %s3001_s24  ;;  %v1860_v52 = vsel %vm1845_vm15, %v3343_v31, %v3921_v11  ;;  %v1189_v31 = vor.u32 %v1188_v20, %v1184_v47  ;;  %v1358_v20 = vsel %vm3113_vm7, %v1356_v21, %v1357_v7 }
  0xf4   : > { %v1904_v49 = vsel %vm1894_vm0, %v1860_v52, %v1612_v62  ;;  %v4033_v62 = vcombine.low %v1348_v29, %v1351_v55  ;;  %v1375_v52 = vrot.slane %v1373_v54, 4 }
  0xf5   : > { %v1754_v10 = vpop.permute.xlu1 %1753  ;;  %v1752_v63 = vpop.permute.xlu0 %1751  ;;  %v1937_v11 = vsel %vm1927_vm1, %v1904_v49, %v1647_v56  ;;  %v1906_v56 = vsel %vm1894_vm0, %v1863_v30, %v3962_v59  ;;  %v1190_v39 = vrot.slane %v1189_v31, 4  ;;  %v4052_v59 = vcombine.low %v3980_v57, %v3982_v12  ;;  %v805_v49 = vld [vmem:[#allocation2 + $0xc8] sm:$0x1] }
  0xf6   : > { %v1970_v43 = vsel %vm1960_vm2, %v1937_v11, %v1682_v9  ;;  %v1939_v18 = vsel %vm1927_vm1, %v1906_v56, %v3972_v2  ;;  %v2741_v12 = vrot.slane %v3980_v57, 9 }
  0xf7   : > { %1664 = vrot.lane.b32.xlu1 %v3995_v0, %s3003_s26  ;;  %1662 = vrot.lane.b32.xlu0 %v3932_v45, %s3003_s26  ;;  %v2003_v32 = vsel %vm1993_vm3, %v1970_v43, %v1717_v4  ;;  %v1195_v13 = vsel %vm3143_vm11, %v1190_v39, %v1194_v3  ;;  %v1397_v3 = vshll.u32 %v4100_v50, 16 }
  0xf8   : > { %v2036_v23 = vsel %vm2026_vm4, %v2003_v32, %v1752_v63  ;;  %v1355_v57 = vsel %vm3113_vm7, %v2741_v12, %v1354_v25  ;;  %v1371_v63 = vrot.slane %v1369_v14, 5  ;;  %v1394_v32 = vshrl.u32 %v4100_v50, 16 }
  0xf9   : > { %v1789_v40 = vpop.permute.xlu1 %1788  ;;  %v1787_v38 = vpop.permute.xlu0 %1786  ;;  %v4098_v55 = vcombine.low %v1355_v57, %v1358_v20 }
  0xfa   : > { %v2069_v33 = vsel %vm2059_vm5, %v2036_v23, %v1787_v38  ;;  %v1376_v11 = vor.u32 %v1375_v52, %v1371_v63  ;;  %v4102_v38 = vld [vmem:[#allocation2 + $0xd0] sm:$0xf] }
  0xfb   : > { %1699 = vrot.lane.b32.xlu1 %v4015_v19, %s3007_s9  ;;  %1697 = vrot.lane.b32.xlu0 %v3953_v58, %s3007_s9  ;;  %v1972_v58 = vsel %vm1960_vm2, %v1939_v18, %v1684_v46  ;;  %v1185_v46 = vsel %vm3143_vm11, %v1180_v6, %v1184_v47  ;;  %v1407_v56 = vshrl.u32 %v4102_v38, 16  ;;  %v1403_v18 = vshll.u32 %v4102_v38, 16 }
  0xfc   : > { %v2005_v8 = vsel %vm1993_vm3, %v1972_v58, %v1719_v51  ;;  %v4073_v4 = vcombine.low %v1185_v46, %v1195_v13  ;;  %v1377_v6 = vrot.slane %v1376_v11, 4  ;;  %v1396_v58 = vrot.slane %v1394_v32, 4 }
  0xfd   : > { %v4041_v16 = vpop.permute.xlu1 %1535  ;;  %v1822_v9 = vpop.permute.xlu0 %1821  ;;  %v2038_v2 = vsel %vm2026_vm4, %v2005_v8, %v1754_v10  ;;  %v1365_v10 = vrot.slane %v1363_v41, 5  ;;  %v4119_v8 = vcombine.low %v4061_v22, %v4066_v15  ;;  %v1409_v13 = vrot.slane %v1407_v56, 4 }
  0xfe   : > { %v2102_v61 = vsel %vm2092_vm6, %v2069_v33, %v1822_v9  ;;  %v1405_v12 = vrot.slane %v1403_v18, 5 }
  0xff   : > { %1734 = vrot.lane.b32.xlu1 %v4033_v62, %s3005_s30  ;;  %1732 = vrot.lane.b32.xlu0 %v3978_v5, %s3005_s30  ;;  %v2071_v5 = vsel %vm2059_vm5, %v2038_v2, %v1789_v40  ;;  %v1366_v31 = vor.u32 %v1365_v10, %v1362_v42  ;;  %v1379_v40 = vshll.u32 %v805_v49, 16  ;;  %v2742_v2 = vrot.slane %v4061_v22, 9 }
 0x100   : > { %2892 = vmatprep.mubr.msk.bf16.mxu0 %vm2152_vm8, %v2102_v61  ;;  %v1399_v61 = vrot.slane %v1397_v3, 5  ;;  %v1410_v57 = vor.u32 %v1409_v13, %v1405_v12 }
 0x101   : > { %v4064_v34 = vpop.permute.xlu1 %1537  ;;  %v1824_v17 = vpop.permute.xlu0 %1823  ;;  %v1367_v23 = vrot.slane %v1366_v31, 4  ;;  %v1381_v39 = vrot.slane %v1379_v40, 5 }
 0x102   : > { %v2104_v51 = vsel %vm2092_vm6, %v2071_v5, %v1824_v17  ;;  %v1391_v17 = vrot.slane %v805_v49, 5  ;;  %v1400_v36 = vor.u32 %v1399_v61, %v1396_v58  ;;  %v1411_v40 = vrot.slane %v1410_v57, 4 }
 0x103   : > { %1769 = vrot.lane.b32.xlu1 %v4052_v59, %s3004_s27  ;;  %1767 = vrot.lane.b32.xlu0 %v3995_v0, %s3004_s27  ;;  %v1372_v25 = vsel %vm3143_vm11, %v1367_v23, %v1371_v63  ;;  %v1382_v5 = vsel %vm3143_vm11, %v1377_v6, %v1381_v39  ;;  %v2990_v63 = vld [vmem:[%s4407_s3] sm:$0xff]  }
 0x104   : > { %2893 = vmatmul.mubr.msk.bf16.gmra.mrb[8].mxu0 %vm2152_vm8, %v2104_v51  ;;  %v4126_v51 = vld [vmem:[#allocation2 + $0xd4] sm:$0x1]  ;;  %v2793_v22 = vcombine.low %v1372_v25, %v1382_v5  ;;  %v1401_v10 = vrot.slane %v1400_v36, 4  ;;  %2916 = vmatprep.subr.bf16.mxu1 %v2990_v63 }
 0x105   : > { %v4082_v28 = vpop.permute.xlu1 %1617  ;;  %v1616_v47 = vpop.permute.xlu0 %1615  ;;  %v1413_v21 = vshll.u32 %v4126_v51, 16  ;;  %2917 = vmatpush3.bf16.msra.mxu1 %v2990_v63 }
 0x106   : > { %v1406_v23 = vsel %vm3143_vm11, %v1401_v10, %v1405_v12 }
 0x107   : > { %1804 = vrot.lane.b32.xlu1 %v4073_v4, %s3008_s10  ;;  %1802 = vrot.lane.b32.xlu0 %v4015_v19, %s3008_s10  ;;  %v1415_v49 = vrot.slane %v1413_v21, 5 }
 0x109   : > { %v4092_v29 = vpop.permute.xlu1 %1652  ;;  %v1651_v27 = vpop.permute.xlu0 %1650  ;;  %v1416_v39 = vsel %vm3143_vm11, %v1411_v40, %v1415_v49 }
 0x10b   : > { %1551 = vrot.lane.b32.xlu1 %v4015_v19, %s3002_s25  ;;  %1837 = vrot.lane.b32.xlu0 %v4033_v62, %s3006_s8  ;;  %v1388_v19 = vrot.slane %v4066_v15, 5  ;;  %v1866_v15 = vsel %vm1845_vm15, %v3472_v48, %v4041_v16 }
 0x10c   : > { %v1908_v41 = vsel %vm1894_vm0, %v1866_v15, %v1616_v47  ;;  %v1869_v47 = vsel %vm1845_vm15, %v3523_v44, %v4064_v34 }
 0x10d   : > { %v1688_v43 = vpop.permute.xlu1 %1687  ;;  %v1686_v30 = vpop.permute.xlu0 %1685  ;;  %v1390_v46 = vrot.slane %v1388_v19, 4  ;;  %v1389_v54 = vsel %vm3113_vm7, %v2742_v2, %v1388_v19  ;;  %v1941_v48 = vsel %vm1927_vm1, %v1908_v41, %v1651_v27  ;;  %v1910_v31 = vsel %vm1894_vm0, %v1869_v47, %v4082_v28  ;;  %v2991_v28 = vld [vmem:[%s4407_s3 + $0x8] sm:$0xff]  }
 0x10e   : > { %v1974_v20 = vsel %vm1960_vm2, %v1941_v48, %v1686_v30  ;;  %v1422_v30 = vrot.slane %v4102_v38, 5  ;;  %v1943_v44 = vsel %vm1927_vm1, %v1910_v31, %v4092_v29  ;;  %v2795_v29 = vcombine.low %v4100_v50, %v4102_v38  ;;  %2918 = vmatprep.subr.bf16.mxu1 %v2991_v28 }
 0x10f   : > { %1553 = vrot.lane.b32.xlu1 %v4073_v4, %s3002_s25  ;;  %1839 = vrot.lane.b32.xlu0 %v4098_v55, %s3006_s8  ;;  %v1392_v14 = vsel %vm3113_vm7, %v1390_v46, %v1391_v17 }
 0x110   : > { %v2794_v27 = vcombine.low %v1389_v54, %v1392_v14  ;;  %v1424_v18 = vrot.slane %v1422_v30, 4  ;;  %2919 = vmatpush3.bf16.msra.mxu1 %v2991_v28 }
 0x111   : > { %v1723_v33 = vpop.permute.xlu1 %1722  ;;  %v1721_v9 = vpop.permute.xlu0 %1720 }
 0x112   : > { %v2007_v52 = vsel %vm1993_vm3, %v1974_v20, %v1721_v9 }
 0x113   : > { %1633 = vrot.lane.b32.xlu1 %v4098_v55, %s3001_s24  ;;  %1631 = vrot.lane.b32.xlu0 %v4033_v62, %s3001_s24 }
 0x115   : > { %v1758_v7 = vpop.permute.xlu1 %1757  ;;  %v1756_v62 = vpop.permute.xlu0 %1755 }
 0x116   : > { %v2040_v11 = vsel %vm2026_vm4, %v2007_v52, %v1756_v62 }
 0x117   : > { %1668 = vrot.lane.b32.xlu1 %v4119_v8, %s3003_s26  ;;  %1666 = vrot.lane.b32.xlu0 %v4052_v59, %s3003_s26  ;;  %s4331_s26 = scalar_lea.vmem %s4409_s5, %s2840_s21 }
 0x119   : > { %v1793_v16 = vpop.permute.xlu1 %1792  ;;  %v1791_v42 = vpop.permute.xlu0 %1790 }
 0x11a   : > { %v2073_v34 = vsel %vm2059_vm5, %v2040_v11, %v1791_v42 }
 0x11b   : > { %1703 = vrot.lane.b32.xlu1 %v2793_v22, %s3007_s9  ;;  %1701 = vrot.lane.b32.xlu0 %v4073_v4, %s3007_s9  ;;  %v1976_v4 = vsel %vm1960_vm2, %v1943_v44, %v1688_v43  ;;  %v2743_v43 = vrot.slane %v4100_v50, 9  ;;  %v2796_v50 = vcombine.low %v1406_v23, %v1416_v39 }
 0x11c   : > { %v2009_v56 = vsel %vm1993_vm3, %v1976_v4, %v1723_v33  ;;  %v1425_v33 = vrot.slane %v4126_v51, 5 }
 0x11d   : > { %v1540_v32 = vpop.permute.xlu1 %1539  ;;  %v1826_v3 = vpop.permute.xlu0 %1825  ;;  %v2042_v6 = vsel %vm2026_vm4, %v2009_v56, %v1758_v7  ;;  %v1423_v35 = vsel %vm3113_vm7, %v2743_v43, %v1422_v30 }
 0x11e   : > { %v2106_v19 = vsel %vm2092_vm6, %v2073_v34, %v1826_v3  ;;  %v1426_v61 = vsel %vm3113_vm7, %v1424_v18, %v1425_v33  ;;  %v1872_v62 = vsel %vm1845_vm15, %v3603_v53, %v1540_v32 }
 0x11f   : > { %1738 = vrot.lane.b32.xlu1 %v2794_v27, %s3005_s30  ;;  %1736 = vrot.lane.b32.xlu0 %v4098_v55, %s3005_s30  ;;  %v2075_v55 = vsel %vm2059_vm5, %v2042_v6, %v1793_v16  ;;  %v2797_v13 = vcombine.low %v1423_v35, %v1426_v61 }
 0x120   : > { %2896 = vmatprep.mubr.msk.bf16.mxu0 %vm2152_vm8, %v2106_v19 }
 0x121   : > { %v1542_v9 = vpop.permute.xlu1 %1541  ;;  %v1828_v38 = vpop.permute.xlu0 %1827 }
 0x122   : > { %v2108_v58 = vsel %vm2092_vm6, %v2075_v55, %v1828_v38  ;;  %v1875_v54 = vsel %vm1845_vm15, %v3645_v24, %v1542_v9 }
 0x123   : > { %1773 = vrot.lane.b32.xlu1 %v2795_v29, %s3004_s27  ;;  %1771 = vrot.lane.b32.xlu0 %v4119_v8, %s3004_s27 }
 0x124   : > { %2897 = vmatmul.mubr.msk.bf16.gmra.mrb[12].mxu0 %vm2152_vm8, %v2108_v58 }
 0x125   : > { %v1622_v2 = vpop.permute.xlu1 %1621  ;;  %v1620_v46 = vpop.permute.xlu0 %1619 }
 0x126   : > { %v1912_v36 = vsel %vm1894_vm0, %v1872_v62, %v1620_v46  ;;  %v1914_v57 = vsel %vm1894_vm0, %v1875_v54, %v1622_v2 }
 0x127   : > { %1808 = vrot.lane.b32.xlu1 %v2796_v50, %s3008_s10  ;;  %1806 = vrot.lane.b32.xlu0 %v2793_v22, %s3008_s10 }
 0x129   : > { %v1657_v25 = vpop.permute.xlu1 %1656  ;;  %v1655_v5 = vpop.permute.xlu0 %1654 }
 0x12a   : > { %v1945_v15 = vsel %vm1927_vm1, %v1912_v36, %v1655_v5  ;;  %v1947_v16 = vsel %vm1927_vm1, %v1914_v57, %v1657_v25 }
 0x12b   : > { %1843 = vrot.lane.b32.xlu1 %v2797_v13, %s3006_s8  ;;  %1841 = vrot.lane.b32.xlu0 %v2794_v27, %s3006_s8 }
 0x12d   : > { %v1692_v8 = vpop.permute.xlu1 %1691  ;;  %v1690_v17 = vpop.permute.xlu0 %1689 }
 0x12e   : > { %v1978_v41 = vsel %vm1960_vm2, %v1945_v15, %v1690_v17  ;;  %v1980_v10 = vsel %vm1960_vm2, %v1947_v16, %v1692_v8 }
 0x131   : > { %v1727_v51 = vpop.permute.xlu1 %1726  ;;  %v1725_v12 = vpop.permute.xlu0 %1724 }
 0x132   : > { %v2011_v14 = vsel %vm1993_vm3, %v1978_v41, %v1725_v12  ;;  %v2013_v47 = vsel %vm1993_vm3, %v1980_v10, %v1727_v51 }
 0x135   : > { %v1762_v7 = vpop.permute.xlu1 %1761  ;;  %v1760_v1 = vpop.permute.xlu0 %1759 }
 0x136   : > { %v2044_v48 = vsel %vm2026_vm4, %v2011_v14, %v1760_v1  ;;  %v2046_v24 = vsel %vm2026_vm4, %v2013_v47, %v1762_v7 }
 0x139   : > { %v1797_v22 = vpop.permute.xlu1 %1796  ;;  %v1795_v21 = vpop.permute.xlu0 %1794 }
 0x13a   : > { %v2077_v53 = vsel %vm2059_vm5, %v2044_v48, %v1795_v21  ;;  %v2079_v52 = vsel %vm2059_vm5, %v2046_v24, %v1797_v22 }
 0x13d   : > { %v1544_v42 = vpop.permute.xlu1 %1543  ;;  %v1830_v20 = vpop.permute.xlu0 %1829 }
 0x13e   : > { %v2110_v63 = vsel %vm2092_vm6, %v2077_v53, %v1830_v20  ;;  %v1878_v56 = vsel %vm1845_vm15, %v3737_v60, %v1544_v42 }
 0x13f   : > { %2900 = vmatprep.mubr.msk.bf16.mxu0 %vm2152_vm8, %v2110_v63 }
 0x141   : > { %v1546_v27 = vpop.permute.xlu1 %1545  ;;  %v1832_v49 = vpop.permute.xlu0 %1831 }
 0x142   : > { %v2112_v31 = vsel %vm2092_vm6, %v2079_v52, %v1832_v49  ;;  %v1881_v18 = vsel %vm1845_vm15, %v3804_v26, %v1546_v27 }
 0x143   : > { %2901 = vmatmul.mubr.msk.bf16.gmra.mrb[16].mxu0 %vm2152_vm8, %v2112_v31 }
 0x145   : > { %v1626_v11 = vpop.permute.xlu1 %1625  ;;  %v1624_v40 = vpop.permute.xlu0 %1623 }
 0x146   : > { %v1916_v29 = vsel %vm1894_vm0, %v1878_v56, %v1624_v40  ;;  %v1918_v55 = vsel %vm1894_vm0, %v1881_v18, %v1626_v11 }
 0x149   : > { %v1661_v30 = vpop.permute.xlu1 %1660  ;;  %v1659_v44 = vpop.permute.xlu0 %1658 }
 0x14a   : > { %v1949_v23 = vsel %vm1927_vm1, %v1916_v29, %v1659_v44  ;;  %v1951_v38 = vsel %vm1927_vm1, %v1918_v55, %v1661_v30 }
 0x14d   : > { %v1696_v34 = vpop.permute.xlu1 %1695  ;;  %v1694_v32 = vpop.permute.xlu0 %1693 }
 0x14e   : > { %v1982_v39 = vsel %vm1960_vm2, %v1949_v23, %v1694_v32  ;;  %v1984_v35 = vsel %vm1960_vm2, %v1951_v38, %v1696_v34  ;;  %v4256_v23 = vld [vmem:[%s4406_s2] ss:$0 sm:$0xff] }
 0x151   : > { %v1731_v3 = vpop.permute.xlu1 %1730  ;;  %v1729_v4 = vpop.permute.xlu0 %1728 }
 0x152   : > { %v2015_v33 = vsel %vm1993_vm3, %v1982_v39, %v1729_v4  ;;  %v2017_v2 = vsel %vm1993_vm3, %v1984_v35, %v1731_v3 }
 0x155   : > { %v1766_v19 = vpop.permute.xlu1 %1765  ;;  %v1764_v28 = vpop.permute.xlu0 %1763 }
 0x156   : > { %v2048_v9 = vsel %vm2026_vm4, %v2015_v33, %v1764_v28  ;;  %v2050_v26 = vsel %vm2026_vm4, %v2017_v2, %v1766_v19 }
 0x159   : > { %v1801_v43 = vpop.permute.xlu1 %1800  ;;  %v1799_v6 = vpop.permute.xlu0 %1798 }
 0x15a   : > { %v2081_v60 = vsel %vm2059_vm5, %v2048_v9, %v1799_v6  ;;  %v2083_v46 = vsel %vm2059_vm5, %v2050_v26, %v1801_v43 }
 0x15d   : > { %v1548_v58 = vpop.permute.xlu1 %1547  ;;  %v1834_v50 = vpop.permute.xlu0 %1833 }
 0x15e   : > { %v2114_v61 = vsel %vm2092_vm6, %v2081_v60, %v1834_v50  ;;  %v1884_v21 = vsel %vm1845_vm15, %v3875_v37, %v1548_v58 }
 0x15f   : > { %2904 = vmatprep.mubr.msk.bf16.mxu0 %vm2152_vm8, %v2114_v61 }
 0x161   : > { %v1550_v13 = vpop.permute.xlu1 %1549  ;;  %v1836_v25 = vpop.permute.xlu0 %1835 }
 0x162   : > { %v2116_v5 = vsel %vm2092_vm6, %v2083_v46, %v1836_v25  ;;  %v1887_v16 = vsel %vm1845_vm15, %v3932_v45, %v1550_v13 }
 0x163   : > { %2905 = vmatmul.mubr.msk.bf16.gmra.mrb[20].mxu0 %vm2152_vm8, %v2116_v5 }
 0x165   : > { %v1630_v8 = vpop.permute.xlu1 %1629  ;;  %v1628_v17 = vpop.permute.xlu0 %1627 }
 0x166   : > { %v1920_v41 = vsel %vm1894_vm0, %v1884_v21, %v1628_v17  ;;  %v1922_v42 = vsel %vm1894_vm0, %v1887_v16, %v1630_v8 }
 0x169   : > { %v1665_v51 = vpop.permute.xlu1 %1664  ;;  %v1663_v12 = vpop.permute.xlu0 %1662 }
 0x16a   : > { %v1953_v54 = vsel %vm1927_vm1, %v1920_v41, %v1663_v12  ;;  %v1955_v10 = vsel %vm1927_vm1, %v1922_v42, %v1665_v51 }
 0x16d   : > { %v1700_v7 = vpop.permute.xlu1 %1699  ;;  %v1698_v1 = vpop.permute.xlu0 %1697 }
 0x16e   : > { %v1986_v48 = vsel %vm1960_vm2, %v1953_v54, %v1698_v1  ;;  %v1988_v24 = vsel %vm1960_vm2, %v1955_v10, %v1700_v7 }
 0x171   : > { %v1735_v62 = vpop.permute.xlu1 %1734  ;;  %v1733_v36 = vpop.permute.xlu0 %1732 }
 0x172   : > { %v2019_v53 = vsel %vm1993_vm3, %v1986_v48, %v1733_v36  ;;  %v2021_v27 = vsel %vm1993_vm3, %v1988_v24, %v1735_v62 }
 0x175   : > { %v1770_v15 = vpop.permute.xlu1 %1769  ;;  %v1768_v22 = vpop.permute.xlu0 %1767 }
 0x176   : > { %v2052_v20 = vsel %vm2026_vm4, %v2019_v53, %v1768_v22  ;;  %v2054_v45 = vsel %vm2026_vm4, %v2021_v27, %v1770_v15 }
 0x179   : > { %v1805_v14 = vpop.permute.xlu1 %1804  ;;  %v1803_v57 = vpop.permute.xlu0 %1802 }
 0x17a   : > { %v2085_v37 = vsel %vm2059_vm5, %v2052_v20, %v1803_v57  ;;  %v2087_v49 = vsel %vm2059_vm5, %v2054_v45, %v1805_v14 }
 0x17d   : > { %v1552_v63 = vpop.permute.xlu1 %1551  ;;  %v1838_v47 = vpop.permute.xlu0 %1837 }
 0x17e   : > { %v2118_v52 = vsel %vm2092_vm6, %v2085_v37, %v1838_v47  ;;  %v1890_v6 = vsel %vm1845_vm15, %v3995_v0, %v1552_v63 }
 0x17f   : > { %2908 = vmatprep.mubr.msk.bf16.mxu0 %vm2152_vm8, %v2118_v52 }
 0x181   : > { %v1554_v31 = vpop.permute.xlu1 %1553  ;;  %v1840_v11 = vpop.permute.xlu0 %1839 }
 0x182   : > { %v2120_v40 = vsel %vm2092_vm6, %v2087_v49, %v1840_v11  ;;  %v1893_v43 = vsel %vm1845_vm15, %v4052_v59, %v1554_v31 }
 0x183   : > { %2909 = vmatmul.mubr.msk.bf16.gmra.mrb[24].mxu0 %vm2152_vm8, %v2120_v40 }
 0x185   : > { %v1634_v30 = vpop.permute.xlu1 %1633  ;;  %v1632_v44 = vpop.permute.xlu0 %1631 }
 0x186   : > { %v1926_v39 = vsel %vm1894_vm0, %v1893_v43, %v1634_v30  ;;  %v1924_v33 = vsel %vm1894_vm0, %v1890_v6, %v1632_v44 }
 0x189   : > { %v1669_v34 = vpop.permute.xlu1 %1668  ;;  %v1667_v32 = vpop.permute.xlu0 %1666 }
 0x18a   : > { %v1959_v55 = vsel %vm1927_vm1, %v1926_v39, %v1669_v34  ;;  %v1957_v58 = vsel %vm1927_vm1, %v1924_v33, %v1667_v32 }
 0x18d   : > { %v1704_v3 = vpop.permute.xlu1 %1703  ;;  %v1702_v4 = vpop.permute.xlu0 %1701 }
 0x18e   : > { %v1992_v50 = vsel %vm1960_vm2, %v1959_v55, %v1704_v3  ;;  %v1990_v0 = vsel %vm1960_vm2, %v1957_v58, %v1702_v4 }
 0x191   : > { %v1739_v19 = vpop.permute.xlu1 %1738  ;;  %v1737_v28 = vpop.permute.xlu0 %1736 }
 0x192   : > { %v2025_v2 = vsel %vm1993_vm3, %v1992_v50, %v1739_v19  ;;  %v2023_v13 = vsel %vm1993_vm3, %v1990_v0, %v1737_v28 }
 0x195   : > { %v1774_v56 = vpop.permute.xlu1 %1773  ;;  %v1772_v29 = vpop.permute.xlu0 %1771 }
 0x196   : > { %v2058_v25 = vsel %vm2026_vm4, %v2025_v2, %v1774_v56  ;;  %v2056_v8 = vsel %vm2026_vm4, %v2023_v13, %v1772_v29 }
 0x198   : > { %v2886_v18 = vpop.f32.mrb[0].mxu0 }
 0x199   : > { %v2232_v9 = vadd.f32 %v2886_v18, %v4256_v23  ;;  %v1809_v38 = vpop.permute.xlu1 %1808  ;;  %v2223_v60 = vpop.f32.mrb[1].mxu0 }
 0x19a   : > { %v2224_v59 = vadd.f32 %v4256_v23, %v2223_v60  ;;  %v1807_v35 = vpop.permute.xlu0 %1806  ;;  %v2887_v61 = vpop.f32.mrb[2].mxu0  ;;  %v2091_v51 = vsel %vm2059_vm5, %v2058_v25, %v1809_v38 }
 0x19b   : > { %v2235_v26 = vadd.f32 %v2887_v61, %v4256_v23  ;;  %v2226_v46 = vpop.f32.mrb[3].mxu0  ;;  %v2352_v17 = vmax.f32 %v2232_v9, 0.0  ;;  %v2089_v62 = vsel %vm2059_vm5, %v2056_v8, %v1807_v35 }
 0x19c   : > { %v2227_v5 = vadd.f32 %v4256_v23, %v2226_v46  ;;  %v2350_v1 = vmax.f32 %v2224_v59, 0.0 }
 0x19d   : > { %v2353_v12 = vmax.f32 %v2235_v26, 0.0  ;;  %v1844_v7 = vpop.permute.xlu1 %1843 }
 0x19e   : > { %v2351_v36 = vmax.f32 %v2227_v5, 0.0  ;;  %v2124_v15 = vsel %vm2092_vm6, %v2091_v51, %v1844_v7  ;;  %v1842_v22 = vpop.permute.xlu0 %1841 }
 0x19f   : > { %v2383_v21 = vpack.c.bf16 %v2353_v12, %v2352_v17  ;;  %v2122_v41 = vsel %vm2092_vm6, %v2089_v62, %v1842_v22 }
 0x1a0   : > { %2912 = vmatprep.mubr.msk.bf16.mxu0 %vm2152_vm8, %v2122_v41  ;;  %v2382_v54 = vpack.c.bf16 %v2351_v36, %v2350_v1 }
 0x1a1   : > { %2913 = vmatmul.mubr.msk.bf16.gmra.mrb[28].mxu0 %vm2152_vm8, %v2124_v15 }
 0x1a2   : > { %2920 = vmatprep.mubr.msk.bf16.mxu1 %vm2092_vm6, %v2382_v54 }
 0x1a3   : > { %2921 = vmatmul.mubr.msk.bf16.vlgmr.msra.gmra.mrb[0].mxu1 %vm2092_vm6, %v2383_v21 }
 0x1b7   : > { %v2890_v14 = vpop.f32.mrb[4].mxu0 }
 0x1b8   : > { %v2248_v57 = vadd.f32 %v2890_v14, %v4256_v23  ;;  %v2239_v48 = vpop.f32.mrb[5].mxu0 }
 0x1b9   : > { %v2240_v16 = vadd.f32 %v4256_v23, %v2239_v48  ;;  %v2891_v53 = vpop.f32.mrb[6].mxu0 }
 0x1ba   : > { %v2251_v42 = vadd.f32 %v2891_v53, %v4256_v23  ;;  %v2242_v20 = vpop.f32.mrb[7].mxu0  ;;  %v2356_v37 = vmax.f32 %v2248_v57, 0.0 }
 0x1bb   : > { %v2243_v10 = vadd.f32 %v4256_v23, %v2242_v20  ;;  %v2354_v47 = vmax.f32 %v2240_v16, 0.0 }
 0x1bc   : > { %v2357_v63 = vmax.f32 %v2251_v42, 0.0 }
 0x1bd   : > { %v2355_v24 = vmax.f32 %v2243_v10, 0.0 }
 0x1be   : > { %v2385_v52 = vpack.c.bf16 %v2357_v63, %v2356_v37 }
 0x1bf   : > { %v2384_v27 = vpack.c.bf16 %v2355_v24, %v2354_v47 }
 0x1c1   : > { %2924 = vmatprep.mubr.msk.bf16.mxu1 %vm2092_vm6, %v2384_v27 }
 0x1c2   : > { %2925 = vmatmul.mubr.msk.bf16.gmra.mrb[4].mxu1 %vm2092_vm6, %v2385_v52 }
 0x1d7   : > { %v2894_v45 = vpop.f32.mrb[8].mxu0 }
 0x1d8   : > { %v2264_v49 = vadd.f32 %v2894_v45, %v4256_v23  ;;  %v2255_v31 = vpop.f32.mrb[9].mxu0 }
 0x1d9   : > { %v2256_v11 = vadd.f32 %v4256_v23, %v2255_v31  ;;  %v2895_v40 = vpop.f32.mrb[10].mxu0 }
 0x1da   : > { %v2267_v30 = vadd.f32 %v2895_v40, %v4256_v23  ;;  %v2258_v44 = vpop.f32.mrb[11].mxu0  ;;  %v2360_v32 = vmax.f32 %v2264_v49, 0.0 }
 0x1db   : > { %v2259_v34 = vadd.f32 %v4256_v23, %v2258_v44  ;;  %v2358_v4 = vmax.f32 %v2256_v11, 0.0 }
 0x1dc   : > { %v2361_v3 = vmax.f32 %v2267_v30, 0.0 }
 0x1dd   : > { %v2359_v19 = vmax.f32 %v2259_v34, 0.0 }
 0x1de   : > { %v2387_v28 = vpack.c.bf16 %v2361_v3, %v2360_v32  ;;  %v4324_v32 = vld [vmem:[%s4408_s4] ss:$0 sm:$0xff] }
 0x1df   : > { %v2386_v56 = vpack.c.bf16 %v2359_v19, %v2358_v4 }
 0x1e1   : > { %2928 = vmatprep.mubr.msk.bf16.mxu1 %vm2092_vm6, %v2386_v56 }
 0x1e2   : > { %2929 = vmatmul.mubr.msk.bf16.gmra.mrb[8].mxu1 %vm2092_vm6, %v2387_v28 }
 0x1f7   : > { %v2898_v29 = vpop.f32.mrb[12].mxu0 }
 0x1f8   : > { %v2280_v43 = vadd.f32 %v2898_v29, %v4256_v23  ;;  %v2271_v6 = vpop.f32.mrb[13].mxu0 }
 0x1f9   : > { %v2272_v39 = vadd.f32 %v4256_v23, %v2271_v6  ;;  %v2899_v18 = vpop.f32.mrb[14].mxu0 }
 0x1fa   : > { %v2283_v33 = vadd.f32 %v2899_v18, %v4256_v23  ;;  %v2274_v55 = vpop.f32.mrb[15].mxu0  ;;  %v2364_v38 = vmax.f32 %v2280_v43, 0.0 }
 0x1fb   : > { %v2275_v9 = vadd.f32 %v4256_v23, %v2274_v55  ;;  %v2362_v58 = vmax.f32 %v2272_v39, 0.0 }
 0x1fc   : > { %v2365_v60 = vmax.f32 %v2283_v33, 0.0 }
 0x1fd   : > { %v2363_v50 = vmax.f32 %v2275_v9, 0.0 }
 0x1fe   : > { %v2389_v59 = vpack.c.bf16 %v2365_v60, %v2364_v38 }
 0x1ff   : > { %v2388_v35 = vpack.c.bf16 %v2363_v50, %v2362_v58 }
 0x201   : > { %2932 = vmatprep.mubr.msk.bf16.mxu1 %vm2092_vm6, %v2388_v35 }
 0x202   : > { %2933 = vmatmul.mubr.msk.bf16.gmra.mrb[12].mxu1 %vm2092_vm6, %v2389_v59 }
 0x216   : > { %v2902_v61 = vpop.f32.mrb[16].mxu0 }
 0x217   : > { %v2296_v0 = vadd.f32 %v2902_v61, %v4256_v23  ;;  %v2287_v2 = vpop.f32.mrb[17].mxu0 }
 0x218   : > { %v2288_v26 = vadd.f32 %v4256_v23, %v2287_v2  ;;  %v2903_v46 = vpop.f32.mrb[18].mxu0 }
 0x219   : > { %v2299_v13 = vadd.f32 %v2903_v46, %v4256_v23  ;;  %v2290_v25 = vpop.f32.mrb[19].mxu0  ;;  %v2368_v8 = vmax.f32 %v2296_v0, 0.0 }
 0x21a   : > { %v2291_v5 = vadd.f32 %v4256_v23, %v2290_v25  ;;  %v2366_v51 = vmax.f32 %v2288_v26, 0.0 }
 0x21b   : > { %v2369_v17 = vmax.f32 %v2299_v13, 0.0 }
 0x21c   : > { %v2367_v12 = vmax.f32 %v2291_v5, 0.0 }
 0x21d   : > { %v2391_v7 = vpack.c.bf16 %v2369_v17, %v2368_v8 }
 0x21e   : > { %v2390_v1 = vpack.c.bf16 %v2367_v12, %v2366_v51 }
 0x220   : > { %2936 = vmatprep.mubr.msk.bf16.mxu1 %vm2092_vm6, %v2390_v1 }
 0x221   : > { %2937 = vmatmul.mubr.msk.bf16.gmra.mrb[16].mxu1 %vm2092_vm6, %v2391_v7 }
 0x236   : > { %v2906_v62 = vpop.f32.mrb[20].mxu0 }
 0x237   : > { %v2312_v36 = vadd.f32 %v2906_v62, %v4256_v23  ;;  %v2303_v15 = vpop.f32.mrb[21].mxu0 }
 0x238   : > { %v2304_v22 = vadd.f32 %v4256_v23, %v2303_v15  ;;  %v2907_v21 = vpop.f32.mrb[22].mxu0 }
 0x239   : > { %v2315_v41 = vadd.f32 %v2907_v21, %v4256_v23  ;;  %v2306_v54 = vpop.f32.mrb[23].mxu0  ;;  %v2372_v57 = vmax.f32 %v2312_v36, 0.0 }
 0x23a   : > { %v2307_v14 = vadd.f32 %v4256_v23, %v2306_v54  ;;  %v2370_v16 = vmax.f32 %v2304_v22, 0.0 }
 0x23b   : > { %v2373_v48 = vmax.f32 %v2315_v41, 0.0 }
 0x23c   : > { %v2371_v53 = vmax.f32 %v2307_v14, 0.0 }
 0x23d   : > { %v2393_v42 = vpack.c.bf16 %v2373_v48, %v2372_v57 }
 0x23e   : > { %v2392_v20 = vpack.c.bf16 %v2371_v53, %v2370_v16 }
 0x240   : > { %2940 = vmatprep.mubr.msk.bf16.mxu1 %vm2092_vm6, %v2392_v20 }
 0x241   : > { %2941 = vmatmul.mubr.msk.bf16.gmra.mrb[20].mxu1 %vm2092_vm6, %v2393_v42 }
 0x256   : > { %v2910_v10 = vpop.f32.mrb[24].mxu0 }
 0x257   : > { %v2328_v37 = vadd.f32 %v2910_v10, %v4256_v23  ;;  %v2319_v63 = vpop.f32.mrb[25].mxu0 }
 0x258   : > { %v2320_v47 = vadd.f32 %v4256_v23, %v2319_v63  ;;  %v2911_v24 = vpop.f32.mrb[26].mxu0 }
 0x259   : > { %v2331_v52 = vadd.f32 %v2911_v24, %v4256_v23  ;;  %v2322_v27 = vpop.f32.mrb[27].mxu0  ;;  %v2376_v49 = vmax.f32 %v2328_v37, 0.0 }
 0x25a   : > { %v2323_v45 = vadd.f32 %v4256_v23, %v2322_v27  ;;  %v2374_v11 = vmax.f32 %v2320_v47, 0.0 }
 0x25b   : > { %v2377_v31 = vmax.f32 %v2331_v52, 0.0 }
 0x25c   : > { %v2375_v40 = vmax.f32 %v2323_v45, 0.0 }
 0x25d   : > { %v2395_v30 = vpack.c.bf16 %v2377_v31, %v2376_v49 }
 0x25e   : > { %v2394_v44 = vpack.c.bf16 %v2375_v40, %v2374_v11 }
 0x260   : > { %2944 = vmatprep.mubr.msk.bf16.mxu1 %vm2092_vm6, %v2394_v44 }
 0x261   : > { %2945 = vmatmul.mubr.msk.bf16.gmra.mrb[24].mxu1 %vm2092_vm6, %v2395_v30 }
 0x274   : > { %v2914_v34 = vpop.f32.mrb[28].mxu0 }
 0x275   : > { %v2344_v3 = vadd.f32 %v2914_v34, %v4256_v23  ;;  %v2335_v4 = vpop.f32.mrb[29].mxu0 }
 0x276   : > { %v2336_v19 = vadd.f32 %v4256_v23, %v2335_v4  ;;  %v2915_v28 = vpop.f32.mrb[30].mxu0  ;;  %v2922_v56 = vpop.f32.mrb[0].mxu1 }
 0x277   : > { %v2347_v29 = vadd.f32 %v2915_v28, %v4256_v23  ;;  %v2338_v43 = vpop.f32.mrb[31].mxu0  ;;  %v2512_v6 = vadd.f32 %v2922_v56, %v4324_v32  ;;  %v2503_v39 = vpop.f32.mrb[1].mxu1  ;;  %v2380_v9 = vmax.f32 %v2344_v3, 0.0 }
 0x278   : > { %v2339_v18 = vadd.f32 %v4256_v23, %v2338_v43  ;;  %v2504_v33 = vadd.f32 %v4324_v32, %v2503_v39  ;;  %v2923_v55 = vpop.f32.mrb[2].mxu1  ;;  %v2378_v50 = vmax.f32 %v2336_v19, 0.0 }
 0x279   : > { %v2381_v38 = vmax.f32 %v2347_v29, 0.0  ;;  %2632 = vst [vmem:[%s4331_s26 + $0x10] sm:$0xff] %v2512_v6  ;;  %v2515_v60 = vadd.f32 %v2923_v55, %v4324_v32  ;;  %v2506_v58 = vpop.f32.mrb[3].mxu1 }
 0x27a   : > { %v2379_v59 = vmax.f32 %v2339_v18, 0.0  ;;  %2630 = vst [vmem:[%s4331_s26] sm:$0xff] %v2504_v33  ;;  %v2507_v35 = vadd.f32 %v4324_v32, %v2506_v58 }
 0x27b   : > { %v2397_v61 = vpack.c.bf16 %v2381_v38, %v2380_v9  ;;  %2633 = vst [vmem:[%s4331_s26 + $0x18] sm:$0xff] %v2515_v60 }
 0x27c   : > { %v2396_v23 = vpack.c.bf16 %v2379_v59, %v2378_v50  ;;  %2631 = vst [vmem:[%s4331_s26 + $0x8] sm:$0xff] %v2507_v35 }
 0x27e   : > { %2948 = vmatprep.mubr.msk.bf16.mxu1 %vm2092_vm6, %v2396_v23 }
 0x27f   : > { %2949 = vmatmul.mubr.msk.bf16.gmra.mrb[28].mxu1 %vm2092_vm6, %v2397_v61 }
 0x295   : > { %v2926_v0 = vpop.f32.mrb[4].mxu1 }
 0x296   : > { %v2528_v2 = vadd.f32 %v2926_v0, %v4324_v32  ;;  %v2519_v26 = vpop.f32.mrb[5].mxu1 }
 0x297   : > { %v2520_v46 = vadd.f32 %v4324_v32, %v2519_v26  ;;  %v2927_v13 = vpop.f32.mrb[6].mxu1 }
 0x298   : > { %2636 = vst [vmem:[%s4331_s26 + $0x30] sm:$0xff] %v2528_v2  ;;  %v2531_v25 = vadd.f32 %v2927_v13, %v4324_v32  ;;  %v2522_v5 = vpop.f32.mrb[7].mxu1 }
 0x299   : > { %2634 = vst [vmem:[%s4331_s26 + $0x20] sm:$0xff] %v2520_v46  ;;  %v2523_v8 = vadd.f32 %v4324_v32, %v2522_v5 }
 0x29a   : > { %2637 = vst [vmem:[%s4331_s26 + $0x38] sm:$0xff] %v2531_v25 }
 0x29b   : > { %2635 = vst [vmem:[%s4331_s26 + $0x28] sm:$0xff] %v2523_v8 }
 0x2b5   : > { %v2930_v17 = vpop.f32.mrb[8].mxu1 }
 0x2b6   : > { %v2544_v51 = vadd.f32 %v2930_v17, %v4324_v32  ;;  %v2535_v12 = vpop.f32.mrb[9].mxu1 }
 0x2b7   : > { %v2536_v7 = vadd.f32 %v4324_v32, %v2535_v12  ;;  %v2931_v1 = vpop.f32.mrb[10].mxu1 }
 0x2b8   : > { %2640 = vst [vmem:[%s4331_s26 + $0x50] sm:$0xff] %v2544_v51  ;;  %v2547_v62 = vadd.f32 %v2931_v1, %v4324_v32  ;;  %v2538_v36 = vpop.f32.mrb[11].mxu1 }
 0x2b9   : > { %2638 = vst [vmem:[%s4331_s26 + $0x40] sm:$0xff] %v2536_v7  ;;  %v2539_v15 = vadd.f32 %v4324_v32, %v2538_v36 }
 0x2ba   : > { %2641 = vst [vmem:[%s4331_s26 + $0x58] sm:$0xff] %v2547_v62 }
 0x2bb   : > { %2639 = vst [vmem:[%s4331_s26 + $0x48] sm:$0xff] %v2539_v15 }
 0x2d5   : > { %v2934_v22 = vpop.f32.mrb[12].mxu1 }
 0x2d6   : > { %v2560_v21 = vadd.f32 %v2934_v22, %v4324_v32  ;;  %v2551_v41 = vpop.f32.mrb[13].mxu1 }
 0x2d7   : > { %v2552_v54 = vadd.f32 %v4324_v32, %v2551_v41  ;;  %v2935_v14 = vpop.f32.mrb[14].mxu1 }
 0x2d8   : > { %2644 = vst [vmem:[%s4331_s26 + $0x70] sm:$0xff] %v2560_v21  ;;  %v2563_v57 = vadd.f32 %v2935_v14, %v4324_v32  ;;  %v2554_v48 = vpop.f32.mrb[15].mxu1 }
 0x2d9   : > { %2642 = vst [vmem:[%s4331_s26 + $0x60] sm:$0xff] %v2552_v54  ;;  %v2555_v16 = vadd.f32 %v4324_v32, %v2554_v48 }
 0x2da   : > { %2645 = vst [vmem:[%s4331_s26 + $0x78] sm:$0xff] %v2563_v57 }
 0x2db   : > { %2643 = vst [vmem:[%s4331_s26 + $0x68] sm:$0xff] %v2555_v16 }
 0x2f4   : > { %v2938_v53 = vpop.f32.mrb[16].mxu1 }
 0x2f5   : > { %v2576_v42 = vadd.f32 %v2938_v53, %v4324_v32  ;;  %v2567_v20 = vpop.f32.mrb[17].mxu1 }
 0x2f6   : > { %v2568_v10 = vadd.f32 %v4324_v32, %v2567_v20  ;;  %v2939_v37 = vpop.f32.mrb[18].mxu1 }
 0x2f7   : > { %2648 = vst [vmem:[%s4331_s26 + $0x90] sm:$0xff] %v2576_v42  ;;  %v2579_v63 = vadd.f32 %v2939_v37, %v4324_v32  ;;  %v2570_v47 = vpop.f32.mrb[19].mxu1 }
 0x2f8   : > { %2646 = vst [vmem:[%s4331_s26 + $0x80] sm:$0xff] %v2568_v10  ;;  %v2571_v24 = vadd.f32 %v4324_v32, %v2570_v47 }
 0x2f9   : > { %2649 = vst [vmem:[%s4331_s26 + $0x98] sm:$0xff] %v2579_v63 }
 0x2fa   : > { %2647 = vst [vmem:[%s4331_s26 + $0x88] sm:$0xff] %v2571_v24 }
 0x314   : > { %v2942_v52 = vpop.f32.mrb[20].mxu1 }
 0x315   : > { %v2592_v27 = vadd.f32 %v2942_v52, %v4324_v32  ;;  %v2583_v45 = vpop.f32.mrb[21].mxu1 }
 0x316   : > { %v2584_v49 = vadd.f32 %v4324_v32, %v2583_v45  ;;  %v2943_v31 = vpop.f32.mrb[22].mxu1 }
 0x317   : > { %2652 = vst [vmem:[%s4331_s26 + $0xb0] sm:$0xff] %v2592_v27  ;;  %v2595_v11 = vadd.f32 %v2943_v31, %v4324_v32  ;;  %v2586_v40 = vpop.f32.mrb[23].mxu1 }
 0x318   : > { %2650 = vst [vmem:[%s4331_s26 + $0xa0] sm:$0xff] %v2584_v49  ;;  %v2587_v30 = vadd.f32 %v4324_v32, %v2586_v40 }
 0x319   : > { %2653 = vst [vmem:[%s4331_s26 + $0xb8] sm:$0xff] %v2595_v11 }
 0x31a   : > { %2651 = vst [vmem:[%s4331_s26 + $0xa8] sm:$0xff] %v2587_v30 }
 0x334   : > { %v2946_v44 = vpop.f32.mrb[24].mxu1 }
 0x335   : > { %v2608_v34 = vadd.f32 %v2946_v44, %v4324_v32  ;;  %v2599_v3 = vpop.f32.mrb[25].mxu1 }
 0x336   : > { %v2600_v4 = vadd.f32 %v4324_v32, %v2599_v3  ;;  %v2947_v19 = vpop.f32.mrb[26].mxu1 }
 0x337   : > { %2656 = vst [vmem:[%s4331_s26 + $0xd0] sm:$0xff] %v2608_v34  ;;  %v2611_v28 = vadd.f32 %v2947_v19, %v4324_v32  ;;  %v2602_v56 = vpop.f32.mrb[27].mxu1 }
 0x338   : > { %2654 = vst [vmem:[%s4331_s26 + $0xc0] sm:$0xff] %v2600_v4  ;;  %v2603_v29 = vadd.f32 %v4324_v32, %v2602_v56 }
 0x339   : > { %2657 = vst [vmem:[%s4331_s26 + $0xd8] sm:$0xff] %v2611_v28 }
 0x33a   : > { %2655 = vst [vmem:[%s4331_s26 + $0xc8] sm:$0xff] %v2603_v29 }
 0x352   : > { %v2950_v43 = vpop.f32.mrb[28].mxu1 }
 0x353   : > { %v2624_v6 = vadd.f32 %v2950_v43, %v4324_v32  ;;  %v2615_v39 = vpop.f32.mrb[29].mxu1 }
 0x354   : > { %v2616_v18 = vadd.f32 %v4324_v32, %v2615_v39  ;;  %v2951_v33 = vpop.f32.mrb[30].mxu1 }
 0x355   : > { %2660 = vst [vmem:[%s4331_s26 + $0xf0] sm:$0xff] %v2624_v6  ;;  %v2627_v55 = vadd.f32 %v2951_v33, %v4324_v32  ;;  %v2618_v9 = vpop.f32.mrb[31].mxu1 }
 0x356   : > { %2658 = vst [vmem:[%s4331_s26 + $0xe0] sm:$0xff] %v2616_v18  ;;  %v2619_v38 = vadd.f32 %v4324_v32, %v2618_v9 }
 0x357   : > { %2661 = vst [vmem:[%s4331_s26 + $0xf8] sm:$0xff] %v2627_v55 }
 0x358   : > { %2659 = vst [vmem:[%s4331_s26 + $0xe8] sm:$0xff] %v2619_v38 }
 0x359 PF: > { %s15_s18 = sadd.s32 1, %s2998_s18  }
 0x35a   : > { %p12_p4 = scmp.ge.s32.totalorder %s15_s18, 4  }
 0x35c   :  { %14 = sbr.rel (!%p12_p4) target bundleno = 1 (0x1), region = 71 }

</bundles_post_ra>
